<compile_context>
chip_gen: v6e
topology: v6e:2x2x1
jax: 0.10.0
libtpu: 0.0.40
codegen_flags: <defaults>
</compile_context>

<pallas_src>
import math
import jax
import jax.numpy as jnp
from jax import lax
from jax.experimental import pallas as pl
from jax.experimental.pallas import tpu as pltpu


# ----------------------------------------------------------------------------
# helpers
# ----------------------------------------------------------------------------
def _silu(x):
    return x * jax.nn.sigmoid(x)


def _round_up(x, m):
    return (x + m - 1) // m * m


def _pad2d(a, rows, cols):
    pr, pc = rows - a.shape[0], cols - a.shape[1]
    if pr or pc:
        a = jnp.pad(a, ((0, pr), (0, pc)))
    return a


def _pad_idx(idx, length, fill):
    pad = length - idx.shape[0]
    if pad > 0:
        idx = jnp.concatenate([idx, jnp.full((pad,), fill, jnp.int32)])
    return idx


def _bdot(a, b):
    """bf16-operand matmul with f32 accumulation (mirrors kernel math)."""
    return jnp.dot(a.astype(jnp.bfloat16), b.astype(jnp.bfloat16),
                   preferred_element_type=jnp.float32)


def _vmem_limit_bytes(default_cap=64 * 1024 * 1024):
    """Generation-aware scoped-VMEM budget (~96 MiB on v5e/v6e, ~48 MiB on v7x)."""
    try:
        cap = int(getattr(pltpu.get_tpu_info(), "vmem_capacity_bytes", default_cap))
    except Exception:
        cap = default_cap
    return max(32 * 1024 * 1024, min(cap * 3 // 4, 100 * 1024 * 1024))


# ----------------------------------------------------------------------------
# fused kernel: node emb -> n_block residual blocks -> final node emb
# ----------------------------------------------------------------------------
def _graph_kernel(
    x_in_ref, ea_ref, src_ref, dst_ref, dstr_ref,
    wn_ref, bn_ref, we_ref, be_ref,
    wm_ref, bm_ref, wu_ref, bu_ref,
    wf_e_ref, wf_i_ref, bf_ref,
    o_ref,
    x_sc, agg_sc,
):
    b = pl.program_id(0)           # residual block index   (arbitrary)
    k = pl.program_id(1)           # edge tile index        (arbitrary / reduce)
    nb = pl.num_programs(0)
    nk = pl.num_programs(1)

    n_pad = x_sc.shape[0]
    e_tile = ea_ref.shape[0]

    # ---- fused prologue: node embedding (runs once) -------------------------
    @pl.when((b == 0) & (k == 0))
    def _():
        x_sc[...] = _silu(
            jnp.dot(x_in_ref[...].astype(jnp.bfloat16), wn_ref[...],
                    preferred_element_type=jnp.float32) + bn_ref[...])

    @pl.when(k == 0)
    def _():
        agg_sc[...] = jnp.zeros_like(agg_sc)

    x = x_sc[...]                                  # [Np, H] f32 resident state
    x_bf = x.astype(jnp.bfloat16)

    # ---- edge embedding recomputed per (block, edge tile): tiny K = d_edge --
    e_emb = _silu(
        jnp.dot(ea_ref[...].astype(jnp.bfloat16), we_ref[...],
                preferred_element_type=jnp.float32) + be_ref[...])      # [Et, H]

    # ---- on-chip one-hot gather / scatter matrices (VPU compares) -----------
    ids_en = lax.broadcasted_iota(jnp.int32, (e_tile, n_pad), 1)
    ids_ne = lax.broadcasted_iota(jnp.int32, (n_pad, e_tile), 0)
    s_oh = (ids_en == src_ref[...]).astype(jnp.bfloat16)        # [Et, Np]
    d_oh = (ids_en == dst_ref[...]).astype(jnp.bfloat16)        # [Et, Np]
    dt_oh = (ids_ne == dstr_ref[...]).astype(jnp.bfloat16)      # [Np, Et] (pre-T)

    # gather node states at edge endpoints (MXU, bf16 operands, f32 acc)
    x_src = jnp.dot(s_oh, x_bf, preferred_element_type=jnp.float32)     # [Et, H]
    x_dst = jnp.dot(d_oh, x_bf, preferred_element_type=jnp.float32)     # [Et, H]

    # ---- fused message MLP: single [Et, 3H] @ [3H, H] matmul ----------------
    m_in = jnp.concatenate(
        [x_src.astype(jnp.bfloat16), x_dst.astype(jnp.bfloat16),
         e_emb.astype(jnp.bfloat16)], axis=-1)
    m = _silu(jnp.dot(m_in, wm_ref[0], preferred_element_type=jnp.float32)
              + bm_ref[0])                                              # [Et, H]

    # scatter-add messages to destination nodes (straight MXU matmul, no .T)
    agg_sc[...] += jnp.dot(dt_oh, m.astype(jnp.bfloat16),
                           preferred_element_type=jnp.float32)          # [Np, H]

    # ---- node update at the last edge tile of this block --------------------
    @pl.when(k == nk - 1)
    def _():
        u_in = jnp.concatenate([x_bf, agg_sc[...].astype(jnp.bfloat16)], axis=-1)
        u = _silu(jnp.dot(u_in, wu_ref[0], preferred_element_type=jnp.float32)
                  + bu_ref[0])
        x_sc[...] = x + u

    # ---- fused epilogue: final node embedding (runs once, last step) --------
    @pl.when((b == nb - 1) & (k == nk - 1))
    def _():
        xf = x_sc[...].astype(jnp.bfloat16)
        y = (jnp.dot(xf, wf_e_ref[...], preferred_element_type=jnp.float32)
             + jnp.dot(x_in_ref[...].astype(jnp.bfloat16), wf_i_ref[...],
                       preferred_element_type=jnp.float32)
             + bf_ref[...])
        o_ref[...] = _silu(y)


# ----------------------------------------------------------------------------
# parameter init (PyTorch-Linear-style uniform(+-1/sqrt(fan_in)), stacked blocks)
# ----------------------------------------------------------------------------
def _init_linear(key, fan_in, fan_out):
    kw, kb = jax.random.split(key)
    bound = 1.0 / math.sqrt(fan_in)
    w = jax.random.uniform(kw, (fan_in, fan_out), jnp.float32, -bound, bound)
    b = jax.random.uniform(kb, (fan_out,), jnp.float32, -bound, bound)
    return w, b


def init_params(key, node_input_dim, edge_input_dim, hidden_dim, n_block):
    h = hidden_dim
    keys = jax.random.split(key, 3 + 2 * n_block)
    p = {}
    w, b = _init_linear(keys[0], node_input_dim, h)
    p["node_emb_w"], p["node_emb_b"] = w, b.reshape(1, h)
    w, b = _init_linear(keys[1], edge_input_dim, h)
    p["edge_emb_w"], p["edge_emb_b"] = w, b.reshape(1, h)

    wm, bm, wu, bu = [], [], [], []
    for i in range(n_block):
        wmi, bmi = _init_linear(keys[2 + 2 * i], 3 * h, h)   # [x_src ; x_dst ; e]
        wui, bui = _init_linear(keys[3 + 2 * i], 2 * h, h)   # [x ; agg]
        wm.append(wmi); bm.append(bmi.reshape(1, h))
        wu.append(wui); bu.append(bui.reshape(1, h))
    p["wm"] = jnp.stack(wm)        # [n_block, 3H, H]
    p["bm"] = jnp.stack(bm)        # [n_block, 1, H]
    p["wu"] = jnp.stack(wu)        # [n_block, 2H, H]
    p["bu"] = jnp.stack(bu)        # [n_block, 1, H]

    wf, bf = _init_linear(keys[-1], h + node_input_dim, h)   # [x_emb ; x_inp]
    p["final_w_emb"] = wf[:h]
    p["final_w_inp"] = wf[h:]
    p["final_b"] = bf.reshape(1, h)
    return p


# ----------------------------------------------------------------------------
# forward (Pallas) and pure-JAX reference
# ----------------------------------------------------------------------------
@jax.jit
def graph_embedding_forward(params, x_inp, edge_index, edge_attr):
    """Pallas forward. Returns (x_emb, Z) with Z=None (graph_vector_dim=0)."""
    n, node_in = x_inp.shape
    e, edge_in = edge_attr.shape
    h = params["node_emb_w"].shape[1]
    n_block = params["wm"].shape[0]

    # static padding / tile choices
    n_pad = _round_up(max(n, 8), 8)
    e_pad = _round_up(max(e, 128), 128)
    edge_tile = min(e_pad, 512)                 # big 128-aligned edge tiles
    e_pad = _round_up(e_pad, edge_tile)
    n_etiles = e_pad // edge_tile
    d_node = _round_up(node_in, 8)
    d_edge = _round_up(edge_in, 8)

    x_p = _pad2d(x_inp, n_pad, d_node)
    ea_p = _pad2d(edge_attr, e_pad, d_edge)
    # NOTE: real edge indices must be < n (< n_pad); padded edges use fill=n_pad
    # which never matches a node row, so they contribute zero.
    src_col = _pad_idx(edge_index[0].astype(jnp.int32), e_pad, n_pad).reshape(e_pad, 1)
    dst_p = _pad_idx(edge_index[1].astype(jnp.int32), e_pad, n_pad)
    dst_col = dst_p.reshape(e_pad, 1)
    dst_row = dst_p.reshape(1, e_pad)

    # MXU operands cast to bf16 once; small fan-in dims zero-padded
    wn = _pad2d(params["node_emb_w"], d_node, h).astype(jnp.bfloat16)
    we = _pad2d(params["edge_emb_w"], d_edge, h).astype(jnp.bfloat16)
    wf_e = params["final_w_emb"].astype(jnp.bfloat16)
    wf_i = _pad2d(params["final_w_inp"], d_node, h).astype(jnp.bfloat16)
    wm = params["wm"].astype(jnp.bfloat16)
    wu = params["wu"].astype(jnp.bfloat16)

    edge_map = lambda b, k: (k, 0)
    const_map = lambda b, k: (0, 0)
    blk_map = lambda b, k: (b, 0, 0)

    # advisory cost estimate for XLA scheduling
    flops = int(n_block * e_pad * h * (6 * n_pad + 6 * h + 2 * d_edge)
                + n_block * 4 * n_pad * h * h
                + 2 * n_pad * h * (2 * d_node + h))
    transcendentals = int(n_block * h * (2 * e_pad + n_pad) + 2 * n_pad * h)
    bytes_accessed = int(
        4 * (x_p.size + n_block * ea_p.size) + 4 * 3 * n_block * e_pad
        + 2 * (wn.size + we.size + wf_e.size + wf_i.size + wm.size + wu.size)
        + 4 * (params["bm"].size + params["bu"].size + 4 * h)
        + 4 * n_pad * h)

    x_out = pl.pallas_call(
        _graph_kernel,
        grid_spec=pltpu.PrefetchScalarGridSpec(
            num_scalar_prefetch=0,
            grid=(n_block, n_etiles),
            in_specs=[
                pl.BlockSpec((n_pad, d_node), const_map),           # x_inp (padded)
                pl.BlockSpec((edge_tile, d_edge), edge_map),        # edge_attr
                pl.BlockSpec((edge_tile, 1), edge_map),             # src (col)
                pl.BlockSpec((edge_tile, 1), edge_map),             # dst (col)
                pl.BlockSpec((1, edge_tile), lambda b, k: (0, k)),  # dst (row)
                pl.BlockSpec((d_node, h), const_map),               # node emb W
                pl.BlockSpec((1, h), const_map),                    # node emb b
                pl.BlockSpec((d_edge, h), const_map),               # edge emb W
                pl.BlockSpec((1, h), const_map),                    # edge emb b
                pl.BlockSpec((1, 3 * h, h), blk_map),               # wm
                pl.BlockSpec((1, 1, h), blk_map),                   # bm
                pl.BlockSpec((1, 2 * h, h), blk_map),               # wu
                pl.BlockSpec((1, 1, h), blk_map),                   # bu
                pl.BlockSpec((h, h), const_map),                    # final W (emb)
                pl.BlockSpec((d_node, h), const_map),               # final W (inp)
                pl.BlockSpec((1, h), const_map),                    # final b
            ],
            out_specs=pl.BlockSpec((n_pad, h), const_map),
            scratch_shapes=[
                pltpu.VMEM((n_pad, h), jnp.float32),   # resident node state
                pltpu.VMEM((n_pad, h), jnp.float32),   # message aggregation
            ],
        ),
        out_shape=jax.ShapeDtypeStruct((n_pad, h), jnp.float32),
        compiler_params=pltpu.CompilerParams(
            dimension_semantics=("arbitrary", "arbitrary"),
            vmem_limit_bytes=_vmem_limit_bytes(),
        ),
        cost_estimate=pl.CostEstimate(
            flops=flops, transcendentals=transcendentals,
            bytes_accessed=bytes_accessed),
    )(x_p, ea_p, src_col, dst_col, dst_row,
      wn, params["node_emb_b"], we, params["edge_emb_b"],
      wm, params["bm"], wu, params["bu"],
      wf_e, wf_i, params["final_b"])

    return x_out[:n], None      # Readout disabled (graph_vector_dim=0) -> Z=None


def graph_embedding_reference(params, x_inp, edge_index, edge_attr):
    """Pure-JAX reference (gather / segment_sum) with matching bf16 rounding."""
    n = x_inp.shape[0]
    src, dst = edge_index[0], edge_index[1]

    x_emb = _silu(_bdot(x_inp, params["node_emb_w"]) + params["node_emb_b"])
    e_emb = _silu(_bdot(edge_attr, params["edge_emb_w"]) + params["edge_emb_b"])
    for i in range(params["wm"].shape[0]):
        x_r = x_emb.astype(jnp.bfloat16).astype(jnp.float32)
        m_in = jnp.concatenate([x_r[src], x_r[dst], e_emb], axis=-1)
        m = _silu(_bdot(m_in, params["wm"][i]) + params["bm"][i])
        agg = jax.ops.segment_sum(m.astype(jnp.bfloat16).astype(jnp.float32),
                                  dst, num_segments=n)
        u_in = jnp.concatenate([x_emb, agg], axis=-1)
        x_emb = x_emb + _silu(_bdot(u_in, params["wu"][i]) + params["bu"][i])
    x_emb = _silu(_bdot(x_emb, params["final_w_emb"])
                  + _bdot(x_inp, params["final_w_inp"]) + params["final_b"])
    return x_emb, None


# ----------------------------------------------------------------------------
# main
# ----------------------------------------------------------------------------
if __name__ == "__main__":
    key = jax.random.PRNGKey(0)
    k_x, k_e, k_src, k_dst, k_par = jax.random.split(key, 5)

    # small synthetic graph (160 edges -> one 256-row edge tile)
    num_nodes = 16
    num_edges = 160
    node_input_dim = 7
    edge_input_dim = 5
    hidden_dim = 128          # module default; lane-dense
    n_block = 2

    x_inp = jax.random.normal(k_x, (num_nodes, node_input_dim), jnp.float32)
    edge_attr = jax.random.normal(k_e, (num_edges, edge_input_dim), jnp.float32)
    src = jax.random.randint(k_src, (num_edges,), 0, num_nodes, dtype=jnp.int32)
    dst = jax.random.randint(k_dst, (num_edges,), 0, num_nodes, dtype=jnp.int32)
    edge_index = jnp.stack([src, dst], axis=0)

    params = init_params(k_par, node_input_dim, edge_input_dim, hidden_dim, n_block)

    x_emb, Z = graph_embedding_forward(params, x_inp, edge_index, edge_attr)
    x_emb = jax.block_until_ready(x_emb)

    x_ref, _ = graph_embedding_reference(params, x_inp, edge_index, edge_attr)
    assert x_emb.shape == (num_nodes, hidden_dim)
    assert Z is None
    max_err = float(jnp.max(jnp.abs(x_emb - x_ref)))
    assert jnp.allclose(x_emb, x_ref, atol=2e-2, rtol=2e-2), (
        f"mismatch vs reference (max abs err {max_err})"
    )

    print("KERNEL_OK")
</pallas_src>

<mosaic_0001>
module attributes {stable_mosaic.version = 11 : i64} {
  func.func @_graph_kernel(%arg0: i32, %arg1: i32, %arg2: memref<16x8xf32, #tpu.memory_space<vmem>>, %arg3: memref<256x8xf32, #tpu.memory_space<vmem>>, %arg4: memref<256x1xi32, #tpu.memory_space<vmem>>, %arg5: memref<256x1xi32, #tpu.memory_space<vmem>>, %arg6: memref<1x256xi32, #tpu.memory_space<vmem>>, %arg7: memref<8x128xbf16, #tpu.memory_space<vmem>>, %arg8: memref<1x128xf32, #tpu.memory_space<vmem>>, %arg9: memref<8x128xbf16, #tpu.memory_space<vmem>>, %arg10: memref<1x128xf32, #tpu.memory_space<vmem>>, %arg11: memref<1x384x128xbf16, #tpu.memory_space<vmem>>, %arg12: memref<1x1x128xf32, #tpu.memory_space<vmem>>, %arg13: memref<1x256x128xbf16, #tpu.memory_space<vmem>>, %arg14: memref<1x1x128xf32, #tpu.memory_space<vmem>>, %arg15: memref<128x128xbf16, #tpu.memory_space<vmem>>, %arg16: memref<8x128xbf16, #tpu.memory_space<vmem>>, %arg17: memref<1x128xf32, #tpu.memory_space<vmem>>, %arg18: memref<16x128xf32, #tpu.memory_space<vmem>>, %arg19: memref<16x128xf32, #tpu.memory_space<vmem>>, %arg20: memref<16x128xf32, #tpu.memory_space<vmem>>) attributes {dimension_semantics = [#tpu.dimension_semantics<arbitrary>, #tpu.dimension_semantics<arbitrary>], iteration_bounds = array<i64: 2, 1>, scalar_prefetch = 0 : i64, scratch_operands = 2 : i64, tpu.core_type = #tpu.core_type<tc>, window_params = [{pipeline_mode = #tpu.pipeline_mode<synchronous>, transform_indices = @transform_0, window_bounds = array<i64: 16, 8>}, {transform_indices = @transform_1, window_bounds = array<i64: 256, 8>}, {transform_indices = @transform_2, window_bounds = array<i64: 256, 1>}, {transform_indices = @transform_3, window_bounds = array<i64: 256, 1>}, {transform_indices = @transform_4, window_bounds = array<i64: 1, 256>}, {pipeline_mode = #tpu.pipeline_mode<synchronous>, transform_indices = @transform_5, window_bounds = array<i64: 8, 128>}, {pipeline_mode = #tpu.pipeline_mode<synchronous>, transform_indices = @transform_6, window_bounds = array<i64: 1, 128>}, {pipeline_mode = #tpu.pipeline_mode<synchronous>, transform_indices = @transform_7, window_bounds = array<i64: 8, 128>}, {pipeline_mode = #tpu.pipeline_mode<synchronous>, transform_indices = @transform_8, window_bounds = array<i64: 1, 128>}, {transform_indices = @transform_9, window_bounds = array<i64: 1, 384, 128>}, {transform_indices = @transform_10, window_bounds = array<i64: 1, 1, 128>}, {transform_indices = @transform_11, window_bounds = array<i64: 1, 256, 128>}, {transform_indices = @transform_12, window_bounds = array<i64: 1, 1, 128>}, {pipeline_mode = #tpu.pipeline_mode<synchronous>, transform_indices = @transform_13, window_bounds = array<i64: 128, 128>}, {pipeline_mode = #tpu.pipeline_mode<synchronous>, transform_indices = @transform_14, window_bounds = array<i64: 8, 128>}, {pipeline_mode = #tpu.pipeline_mode<synchronous>, transform_indices = @transform_15, window_bounds = array<i64: 1, 128>}, {pipeline_mode = #tpu.pipeline_mode<synchronous>, transform_indices = @transform_16, window_bounds = array<i64: 16, 128>}]} {
    %c0_i32 = arith.constant 0 : i32
    %0 = arith.cmpi eq, %arg0, %c0_i32 : i32
    %c0_i32_0 = arith.constant 0 : i32
    %1 = arith.cmpi eq, %arg1, %c0_i32_0 : i32
    %2 = arith.andi %0, %1 : i1
    %3 = arith.extui %2 : i1 to i32
    %c0_i32_1 = arith.constant 0 : i32
    %4 = arith.cmpi ne, %3, %c0_i32_1 : i32
    scf.if %4 {
      %c0_37 = arith.constant 0 : index
      %c0_38 = arith.constant 0 : index
      %75 = vector.load %arg2[%c0_37, %c0_38] : memref<16x8xf32, #tpu.memory_space<vmem>>, vector<16x8xf32>
      %76 = arith.truncf %75 : vector<16x8xf32> to vector<16x8xbf16>
      %c0_39 = arith.constant 0 : index
      %c0_40 = arith.constant 0 : index
      %77 = vector.load %arg7[%c0_39, %c0_40] : memref<8x128xbf16, #tpu.memory_space<vmem>>, vector<8x128xbf16>
      %cst_41 = arith.constant dense<0.000000e+00> : vector<16x128xf32>
      %78 = tpu.matmul %76, %77, %cst_41 {dimension_numbers = #tpu.dot_dimension_numbers<[1], [0], [0], [1], [0, 0, 1, 1], [], []>} : vector<16x8xbf16>, vector<8x128xbf16>, vector<16x128xf32> -> vector<16x128xf32>
      %c0_42 = arith.constant 0 : index
      %c0_43 = arith.constant 0 : index
      %79 = vector.load %arg8[%c0_42, %c0_43] : memref<1x128xf32, #tpu.memory_space<vmem>>, vector<1x128xf32>
      %80 = vector.broadcast %79 : vector<1x128xf32> to vector<16x128xf32>
      %81 = arith.addf %78, %80 : vector<16x128xf32>
      %82 = arith.negf %81 : vector<16x128xf32>
      %83 = math.exp %82 : vector<16x128xf32>
      %cst_44 = arith.constant 1.000000e+00 : f32
      %84 = vector.broadcast %cst_44 : f32 to vector<16x128xf32>
      %85 = arith.addf %84, %83 : vector<16x128xf32>
      %86 = arith.divf %84, %85 : vector<16x128xf32>
      %87 = arith.mulf %81, %86 : vector<16x128xf32>
      %c0_45 = arith.constant 0 : index
      %c0_46 = arith.constant 0 : index
      %88 = vector.load %arg19[%c0_45, %c0_46] : memref<16x128xf32, #tpu.memory_space<vmem>>, vector<16x128xf32>
      tpu.vector_store %arg19[%c0_45, %c0_46], %87 {strides = array<i32>} : memref<16x128xf32, #tpu.memory_space<vmem>>, vector<16x128xf32>,
    } else {
    }
    %c0_i32_2 = arith.constant 0 : i32
    %5 = arith.cmpi eq, %arg1, %c0_i32_2 : i32
    %6 = arith.extui %5 : i1 to i32
    %c0_i32_3 = arith.constant 0 : i32
    %7 = arith.cmpi ne, %6, %c0_i32_3 : i32
    scf.if %7 {
      %cst_37 = arith.constant 0.000000e+00 : f32
      %75 = vector.broadcast %cst_37 : f32 to vector<16x128xf32>
      %c0_38 = arith.constant 0 : index
      %c0_39 = arith.constant 0 : index
      %76 = vector.load %arg20[%c0_38, %c0_39] : memref<16x128xf32, #tpu.memory_space<vmem>>, vector<16x128xf32>
      tpu.vector_store %arg20[%c0_38, %c0_39], %75 {strides = array<i32>} : memref<16x128xf32, #tpu.memory_space<vmem>>, vector<16x128xf32>,
    } else {
    }
    %c0 = arith.constant 0 : index
    %c0_4 = arith.constant 0 : index
    %8 = vector.load %arg19[%c0, %c0_4] : memref<16x128xf32, #tpu.memory_space<vmem>>, vector<16x128xf32>
    %9 = arith.truncf %8 : vector<16x128xf32> to vector<16x128xbf16>
    %c0_5 = arith.constant 0 : index
    %c0_6 = arith.constant 0 : index
    %10 = vector.load %arg3[%c0_5, %c0_6] : memref<256x8xf32, #tpu.memory_space<vmem>>, vector<256x8xf32>
    %11 = arith.truncf %10 : vector<256x8xf32> to vector<256x8xbf16>
    %c0_7 = arith.constant 0 : index
    %c0_8 = arith.constant 0 : index
    %12 = vector.load %arg9[%c0_7, %c0_8] : memref<8x128xbf16, #tpu.memory_space<vmem>>, vector<8x128xbf16>
    %cst = arith.constant dense<0.000000e+00> : vector<256x128xf32>
    %13 = tpu.matmul %11, %12, %cst {dimension_numbers = #tpu.dot_dimension_numbers<[1], [0], [0], [1], [0, 0, 1, 1], [], []>} : vector<256x8xbf16>, vector<8x128xbf16>, vector<256x128xf32> -> vector<256x128xf32>
    %c0_9 = arith.constant 0 : index
    %c0_10 = arith.constant 0 : index
    %14 = vector.load %arg10[%c0_9, %c0_10] : memref<1x128xf32, #tpu.memory_space<vmem>>, vector<1x128xf32>
    %15 = vector.broadcast %14 : vector<1x128xf32> to vector<256x128xf32>
    %16 = arith.addf %13, %15 : vector<256x128xf32>
    %17 = arith.negf %16 : vector<256x128xf32>
    %18 = math.exp %17 : vector<256x128xf32>
    %cst_11 = arith.constant 1.000000e+00 : f32
    %19 = vector.broadcast %cst_11 : f32 to vector<256x128xf32>
    %20 = arith.addf %19, %18 : vector<256x128xf32>
    %21 = arith.divf %19, %20 : vector<256x128xf32>
    %22 = arith.mulf %16, %21 : vector<256x128xf32>
    %23 = tpu.iota {dimensions = array<i32: 1>} : vector<256x16xi32>
    %24 = tpu.iota {dimensions = array<i32: 0>} : vector<16x256xi32>
    %c0_12 = arith.constant 0 : index
    %c0_13 = arith.constant 0 : index
    %25 = vector.load %arg4[%c0_12, %c0_13] : memref<256x1xi32, #tpu.memory_space<vmem>>, vector<256x1xi32>
    %26 = vector.broadcast %25 : vector<256x1xi32> to vector<256x16xi32>
    %27 = arith.cmpi eq, %23, %26 : vector<256x16xi32>
    %28 = arith.extui %27 : vector<256x16xi1> to vector<256x16xi32>
    %29 = arith.sitofp %28 : vector<256x16xi32> to vector<256x16xf32>
    %30 = arith.truncf %29 : vector<256x16xf32> to vector<256x16xbf16>
    %c0_14 = arith.constant 0 : index
    %c0_15 = arith.constant 0 : index
    %31 = vector.load %arg5[%c0_14, %c0_15] : memref<256x1xi32, #tpu.memory_space<vmem>>, vector<256x1xi32>
    %32 = vector.broadcast %31 : vector<256x1xi32> to vector<256x16xi32>
    %33 = arith.cmpi eq, %23, %32 : vector<256x16xi32>
    %34 = arith.extui %33 : vector<256x16xi1> to vector<256x16xi32>
    %35 = arith.sitofp %34 : vector<256x16xi32> to vector<256x16xf32>
    %36 = arith.truncf %35 : vector<256x16xf32> to vector<256x16xbf16>
    %c0_16 = arith.constant 0 : index
    %c0_17 = arith.constant 0 : index
    %37 = vector.load %arg6[%c0_16, %c0_17] : memref<1x256xi32, #tpu.memory_space<vmem>>, vector<1x256xi32>
    %38 = vector.broadcast %37 : vector<1x256xi32> to vector<16x256xi32>
    %39 = arith.cmpi eq, %24, %38 : vector<16x256xi32>
    %40 = arith.extui %39 : vector<16x256xi1> to vector<16x256xi32>
    %41 = arith.sitofp %40 : vector<16x256xi32> to vector<16x256xf32>
    %42 = arith.truncf %41 : vector<16x256xf32> to vector<16x256xbf16>
    %cst_18 = arith.constant dense<0.000000e+00> : vector<256x128xf32>
    %43 = tpu.matmul %30, %9, %cst_18 {dimension_numbers = #tpu.dot_dimension_numbers<[1], [0], [0], [1], [0, 0, 1, 1], [], []>} : vector<256x16xbf16>, vector<16x128xbf16>, vector<256x128xf32> -> vector<256x128xf32>
    %cst_19 = arith.constant dense<0.000000e+00> : vector<256x128xf32>
    %44 = tpu.matmul %36, %9, %cst_19 {dimension_numbers = #tpu.dot_dimension_numbers<[1], [0], [0], [1], [0, 0, 1, 1], [], []>} : vector<256x16xbf16>, vector<16x128xbf16>, vector<256x128xf32> -> vector<256x128xf32>
    %45 = arith.truncf %43 : vector<256x128xf32> to vector<256x128xbf16>
    %46 = arith.truncf %44 : vector<256x128xf32> to vector<256x128xbf16>
    %47 = arith.truncf %22 : vector<256x128xf32> to vector<256x128xbf16>
    %48 = tpu.concatenate %45, %46, %47 in 1 : vector<256x128xbf16>, vector<256x128xbf16>, vector<256x128xbf16> -> vector<256x384xbf16>
    %c0_20 = arith.constant 0 : index
    %c0_21 = arith.constant 0 : index
    %c0_22 = arith.constant 0 : index
    %49 = vector.load %arg11[%c0_20, %c0_21, %c0_22] : memref<1x384x128xbf16, #tpu.memory_space<vmem>>, vector<1x384x128xbf16>
    %50 = vector.shape_cast %49 : vector<1x384x128xbf16> to vector<384x128xbf16>
    %cst_23 = arith.constant dense<0.000000e+00> : vector<256x128xf32>
    %51 = tpu.matmul %48, %50, %cst_23 {dimension_numbers = #tpu.dot_dimension_numbers<[1], [0], [0], [1], [0, 0, 1, 1], [], []>} : vector<256x384xbf16>, vector<384x128xbf16>, vector<256x128xf32> -> vector<256x128xf32>
    %c0_24 = arith.constant 0 : index
    %c0_25 = arith.constant 0 : index
    %c0_26 = arith.constant 0 : index
    %52 = vector.load %arg12[%c0_24, %c0_25, %c0_26] : memref<1x1x128xf32, #tpu.memory_space<vmem>>, vector<1x1x128xf32>
    %53 = vector.shape_cast %52 : vector<1x1x128xf32> to vector<1x128xf32>
    %54 = vector.broadcast %53 : vector<1x128xf32> to vector<256x128xf32>
    %55 = arith.addf %51, %54 : vector<256x128xf32>
    %56 = arith.negf %55 : vector<256x128xf32>
    %57 = math.exp %56 : vector<256x128xf32>
    %cst_27 = arith.constant 1.000000e+00 : f32
    %58 = vector.broadcast %cst_27 : f32 to vector<256x128xf32>
    %59 = arith.addf %58, %57 : vector<256x128xf32>
    %60 = arith.divf %58, %59 : vector<256x128xf32>
    %61 = arith.mulf %55, %60 : vector<256x128xf32>
    %c0_28 = arith.constant 0 : index
    %c0_29 = arith.constant 0 : index
    %62 = vector.load %arg20[%c0_28, %c0_29] : memref<16x128xf32, #tpu.memory_space<vmem>>, vector<16x128xf32>
    %63 = arith.truncf %61 : vector<256x128xf32> to vector<256x128xbf16>
    %cst_30 = arith.constant dense<0.000000e+00> : vector<16x128xf32>
    %64 = tpu.matmul %42, %63, %cst_30 {dimension_numbers = #tpu.dot_dimension_numbers<[1], [0], [0], [1], [0, 0, 1, 1], [], []>} : vector<16x256xbf16>, vector<256x128xbf16>, vector<16x128xf32> -> vector<16x128xf32>
    %65 = arith.addf %62, %64 : vector<16x128xf32>
    %c0_31 = arith.constant 0 : index
    %c0_32 = arith.constant 0 : index
    %66 = vector.load %arg20[%c0_31, %c0_32] : memref<16x128xf32, #tpu.memory_space<vmem>>, vector<16x128xf32>
    tpu.vector_store %arg20[%c0_31, %c0_32], %65 {strides = array<i32>} : memref<16x128xf32, #tpu.memory_space<vmem>>, vector<16x128xf32>,
    %c0_i32_33 = arith.constant 0 : i32
    %67 = arith.cmpi eq, %arg1, %c0_i32_33 : i32
    %68 = arith.extui %67 : i1 to i32
    %c0_i32_34 = arith.constant 0 : i32
    %69 = arith.cmpi ne, %68, %c0_i32_34 : i32
    scf.if %69 {
      %c0_37 = arith.constant 0 : index
      %c0_38 = arith.constant 0 : index
      %75 = vector.load %arg20[%c0_37, %c0_38] : memref<16x128xf32, #tpu.memory_space<vmem>>, vector<16x128xf32>
      %76 = arith.truncf %75 : vector<16x128xf32> to vector<16x128xbf16>
      %77 = tpu.concatenate %9, %76 in 1 : vector<16x128xbf16>, vector<16x128xbf16> -> vector<16x256xbf16>
      %c0_39 = arith.constant 0 : index
      %c0_40 = arith.constant 0 : index
      %c0_41 = arith.constant 0 : index
      %78 = vector.load %arg13[%c0_39, %c0_40, %c0_41] : memref<1x256x128xbf16, #tpu.memory_space<vmem>>, vector<1x256x128xbf16>
      %79 = vector.shape_cast %78 : vector<1x256x128xbf16> to vector<256x128xbf16>
      %cst_42 = arith.constant dense<0.000000e+00> : vector<16x128xf32>
      %80 = tpu.matmul %77, %79, %cst_42 {dimension_numbers = #tpu.dot_dimension_numbers<[1], [0], [0], [1], [0, 0, 1, 1], [], []>} : vector<16x256xbf16>, vector<256x128xbf16>, vector<16x128xf32> -> vector<16x128xf32>
      %c0_43 = arith.constant 0 : index
      %c0_44 = arith.constant 0 : index
      %c0_45 = arith.constant 0 : index
      %81 = vector.load %arg14[%c0_43, %c0_44, %c0_45] : memref<1x1x128xf32, #tpu.memory_space<vmem>>, vector<1x1x128xf32>
      %82 = vector.shape_cast %81 : vector<1x1x128xf32> to vector<1x128xf32>
      %83 = vector.broadcast %82 : vector<1x128xf32> to vector<16x128xf32>
      %84 = arith.addf %80, %83 : vector<16x128xf32>
      %85 = arith.negf %84 : vector<16x128xf32>
      %86 = math.exp %85 : vector<16x128xf32>
      %cst_46 = arith.constant 1.000000e+00 : f32
      %87 = vector.broadcast %cst_46 : f32 to vector<16x128xf32>
      %88 = arith.addf %87, %86 : vector<16x128xf32>
      %89 = arith.divf %87, %88 : vector<16x128xf32>
      %90 = arith.mulf %84, %89 : vector<16x128xf32>
      %91 = arith.addf %8, %90 : vector<16x128xf32>
      %c0_47 = arith.constant 0 : index
      %c0_48 = arith.constant 0 : index
      %92 = vector.load %arg19[%c0_47, %c0_48] : memref<16x128xf32, #tpu.memory_space<vmem>>, vector<16x128xf32>
      tpu.vector_store %arg19[%c0_47, %c0_48], %91 {strides = array<i32>} : memref<16x128xf32, #tpu.memory_space<vmem>>, vector<16x128xf32>,
    } else {
    }
    %c1_i32 = arith.constant 1 : i32
    %70 = arith.cmpi eq, %arg0, %c1_i32 : i32
    %c0_i32_35 = arith.constant 0 : i32
    %71 = arith.cmpi eq, %arg1, %c0_i32_35 : i32
    %72 = arith.andi %70, %71 : i1
    %73 = arith.extui %72 : i1 to i32
    %c0_i32_36 = arith.constant 0 : i32
    %74 = arith.cmpi ne, %73, %c0_i32_36 : i32
    scf.if %74 {
      %c0_37 = arith.constant 0 : index
      %c0_38 = arith.constant 0 : index
      %75 = vector.load %arg19[%c0_37, %c0_38] : memref<16x128xf32, #tpu.memory_space<vmem>>, vector<16x128xf32>
      %76 = arith.truncf %75 : vector<16x128xf32> to vector<16x128xbf16>
      %c0_39 = arith.constant 0 : index
      %c0_40 = arith.constant 0 : index
      %77 = vector.load %arg15[%c0_39, %c0_40] : memref<128x128xbf16, #tpu.memory_space<vmem>>, vector<128x128xbf16>
      %cst_41 = arith.constant dense<0.000000e+00> : vector<16x128xf32>
      %78 = tpu.matmul %76, %77, %cst_41 {dimension_numbers = #tpu.dot_dimension_numbers<[1], [0], [0], [1], [0, 0, 1, 1], [], []>} : vector<16x128xbf16>, vector<128x128xbf16>, vector<16x128xf32> -> vector<16x128xf32>
      %c0_42 = arith.constant 0 : index
      %c0_43 = arith.constant 0 : index
      %79 = vector.load %arg2[%c0_42, %c0_43] : memref<16x8xf32, #tpu.memory_space<vmem>>, vector<16x8xf32>
      %80 = arith.truncf %79 : vector<16x8xf32> to vector<16x8xbf16>
      %c0_44 = arith.constant 0 : index
      %c0_45 = arith.constant 0 : index
      %81 = vector.load %arg16[%c0_44, %c0_45] : memref<8x128xbf16, #tpu.memory_space<vmem>>, vector<8x128xbf16>
      %cst_46 = arith.constant dense<0.000000e+00> : vector<16x128xf32>
      %82 = tpu.matmul %80, %81, %cst_46 {dimension_numbers = #tpu.dot_dimension_numbers<[1], [0], [0], [1], [0, 0, 1, 1], [], []>} : vector<16x8xbf16>, vector<8x128xbf16>, vector<16x128xf32> -> vector<16x128xf32>
      %83 = arith.addf %78, %82 : vector<16x128xf32>
      %c0_47 = arith.constant 0 : index
      %c0_48 = arith.constant 0 : index
      %84 = vector.load %arg17[%c0_47, %c0_48] : memref<1x128xf32, #tpu.memory_space<vmem>>, vector<1x128xf32>
      %85 = vector.broadcast %84 : vector<1x128xf32> to vector<16x128xf32>
      %86 = arith.addf %83, %85 : vector<16x128xf32>
      %87 = arith.negf %86 : vector<16x128xf32>
      %88 = math.exp %87 : vector<16x128xf32>
      %cst_49 = arith.constant 1.000000e+00 : f32
      %89 = vector.broadcast %cst_49 : f32 to vector<16x128xf32>
      %90 = arith.addf %89, %88 : vector<16x128xf32>
      %91 = arith.divf %89, %90 : vector<16x128xf32>
      %92 = arith.mulf %86, %91 : vector<16x128xf32>
      %c0_50 = arith.constant 0 : index
      %c0_51 = arith.constant 0 : index
      %93 = vector.load %arg18[%c0_50, %c0_51] : memref<16x128xf32, #tpu.memory_space<vmem>>, vector<16x128xf32>
      tpu.vector_store %arg18[%c0_50, %c0_51], %92 {strides = array<i32>} : memref<16x128xf32, #tpu.memory_space<vmem>>, vector<16x128xf32>,
    } else {
    }
    return
  }
  func.func @transform_0(%arg0: i32, %arg1: i32) -> (i32, i32) {
    %c0_i32 = arith.constant 0 : i32
    %c0_i32_0 = arith.constant 0 : i32
    %c0_i32_1 = arith.constant 0 : i32
    return %c0_i32, %c0_i32_0 : i32, i32
  }
  func.func @transform_1(%arg0: i32, %arg1: i32) -> (i32, i32) {
    %c0_i32 = arith.constant 0 : i32
    %c0_i32_0 = arith.constant 0 : i32
    return %arg1, %c0_i32 : i32, i32
  }
  func.func @transform_2(%arg0: i32, %arg1: i32) -> (i32, i32) {
    %c0_i32 = arith.constant 0 : i32
    %c0_i32_0 = arith.constant 0 : i32
    return %arg1, %c0_i32 : i32, i32
  }
  func.func @transform_3(%arg0: i32, %arg1: i32) -> (i32, i32) {
    %c0_i32 = arith.constant 0 : i32
    %c0_i32_0 = arith.constant 0 : i32
    return %arg1, %c0_i32 : i32, i32
  }
  func.func @transform_4(%arg0: i32, %arg1: i32) -> (i32, i32) {
    %c0_i32 = arith.constant 0 : i32
    %c0_i32_0 = arith.constant 0 : i32
    return %c0_i32, %arg1 : i32, i32
  }
  func.func @transform_5(%arg0: i32, %arg1: i32) -> (i32, i32) {
    %c0_i32 = arith.constant 0 : i32
    %c0_i32_0 = arith.constant 0 : i32
    %c0_i32_1 = arith.constant 0 : i32
    return %c0_i32, %c0_i32_0 : i32, i32
  }
  func.func @transform_6(%arg0: i32, %arg1: i32) -> (i32, i32) {
    %c0_i32 = arith.constant 0 : i32
    %c0_i32_0 = arith.constant 0 : i32
    %c0_i32_1 = arith.constant 0 : i32
    return %c0_i32, %c0_i32_0 : i32, i32
  }
  func.func @transform_7(%arg0: i32, %arg1: i32) -> (i32, i32) {
    %c0_i32 = arith.constant 0 : i32
    %c0_i32_0 = arith.constant 0 : i32
    %c0_i32_1 = arith.constant 0 : i32
    return %c0_i32, %c0_i32_0 : i32, i32
  }
  func.func @transform_8(%arg0: i32, %arg1: i32) -> (i32, i32) {
    %c0_i32 = arith.constant 0 : i32
    %c0_i32_0 = arith.constant 0 : i32
    %c0_i32_1 = arith.constant 0 : i32
    return %c0_i32, %c0_i32_0 : i32, i32
  }
  func.func @transform_9(%arg0: i32, %arg1: i32) -> (i32, i32, i32) {
    %c0_i32 = arith.constant 0 : i32
    %c0_i32_0 = arith.constant 0 : i32
    %c0_i32_1 = arith.constant 0 : i32
    return %arg0, %c0_i32, %c0_i32_0 : i32, i32, i32
  }
  func.func @transform_10(%arg0: i32, %arg1: i32) -> (i32, i32, i32) {
    %c0_i32 = arith.constant 0 : i32
    %c0_i32_0 = arith.constant 0 : i32
    %c0_i32_1 = arith.constant 0 : i32
    return %arg0, %c0_i32, %c0_i32_0 : i32, i32, i32
  }
  func.func @transform_11(%arg0: i32, %arg1: i32) -> (i32, i32, i32) {
    %c0_i32 = arith.constant 0 : i32
    %c0_i32_0 = arith.constant 0 : i32
    %c0_i32_1 = arith.constant 0 : i32
    return %arg0, %c0_i32, %c0_i32_0 : i32, i32, i32
  }
  func.func @transform_12(%arg0: i32, %arg1: i32) -> (i32, i32, i32) {
    %c0_i32 = arith.constant 0 : i32
    %c0_i32_0 = arith.constant 0 : i32
    %c0_i32_1 = arith.constant 0 : i32
    return %arg0, %c0_i32, %c0_i32_0 : i32, i32, i32
  }
  func.func @transform_13(%arg0: i32, %arg1: i32) -> (i32, i32) {
    %c0_i32 = arith.constant 0 : i32
    %c0_i32_0 = arith.constant 0 : i32
    %c0_i32_1 = arith.constant 0 : i32
    return %c0_i32, %c0_i32_0 : i32, i32
  }
  func.func @transform_14(%arg0: i32, %arg1: i32) -> (i32, i32) {
    %c0_i32 = arith.constant 0 : i32
    %c0_i32_0 = arith.constant 0 : i32
    %c0_i32_1 = arith.constant 0 : i32
    return %c0_i32, %c0_i32_0 : i32, i32
  }
  func.func @transform_15(%arg0: i32, %arg1: i32) -> (i32, i32) {
    %c0_i32 = arith.constant 0 : i32
    %c0_i32_0 = arith.constant 0 : i32
    %c0_i32_1 = arith.constant 0 : i32
    return %c0_i32, %c0_i32_0 : i32, i32
  }
  func.func @transform_16(%arg0: i32, %arg1: i32) -> (i32, i32) {
    %c0_i32 = arith.constant 0 : i32
    %c0_i32_0 = arith.constant 0 : i32
    %c0_i32_1 = arith.constant 0 : i32
    return %c0_i32, %c0_i32_0 : i32, i32
  }
}

</mosaic_0001>

<bundles_post_ra>
// kernel: graph_embedding_forward.1
= control target key start
LH: loop header
LB: loop body
LE: loop exit
PB: predicated region body
PF: predicated region fallthrough
CT: control target
= control target key end

     0   :  { %s5907_s0 = inlined_call_operand.vmem [shape: f32[16,8], index: 0, kind: input, shape index: {}]   ;;  %s5908_s1 = inlined_call_operand.vmem [shape: f32[256,8], index: 1, kind: input, shape index: {}]   ;;  %s5909_s2 = inlined_call_operand.vmem [shape: s32[256,1], index: 2, kind: input, shape index: {}]   ;;  %s5910_s3 = inlined_call_operand.vmem [shape: s32[256,1], index: 3, kind: input, shape index: {}]   ;;  %s5911_s4 = inlined_call_operand.vmem [shape: s32[1,256], index: 4, kind: input, shape index: {}]   ;;  %s5912_s5 = inlined_call_operand.vmem [shape: bf16[8,128], index: 5, kind: input, shape index: {}]   ;;  %s5913_s6 = inlined_call_operand.vmem [shape: f32[1,128], index: 6, kind: input, shape index: {}]   ;;  %s5914_s7 = inlined_call_operand.vmem [shape: bf16[8,128], index: 7, kind: input, shape index: {}]   ;;  %s5915_s8 = inlined_call_operand.vmem [shape: f32[1,128], index: 8, kind: input, shape index: {}]   ;;  %s5916_s9 = inlined_call_operand.vmem [shape: bf16[2,384,128], index: 9, kind: input, shape index: {}]   ;;  %s5917_s10 = inlined_call_operand.vmem [shape: f32[2,1,128], index: 10, kind: input, shape index: {}]   ;;  %s5918_s11 = inlined_call_operand.vmem [shape: bf16[2,256,128], index: 11, kind: input, shape index: {}]   ;;  %s5919_s12 = inlined_call_operand.vmem [shape: f32[2,1,128], index: 12, kind: input, shape index: {}]   ;;  %s5920_s13 = inlined_call_operand.vmem [shape: bf16[128,128], index: 13, kind: input, shape index: {}]   ;;  %s5921_s14 = inlined_call_operand.vmem [shape: bf16[8,128], index: 14, kind: input, shape index: {}]   ;;  %s5922_s15 = inlined_call_operand.vmem [shape: f32[1,128], index: 15, kind: input, shape index: {}]   ;;  %s5923_s16 = inlined_call_operand.hbm [shape: f32[16,128], index: 16, kind: output, shape index: {}]  }
   0x1   :  { %5931 = sst [smem:[#allocation12_spill]] %s5907_s0 }
   0x2   :  { %5932 = sst [smem:[#allocation13_spill]] %s5921_s14 }
   0x3   :  { %5933 = sst [smem:[#allocation14_spill]] %s5922_s15 }
   0x4   :  { %5934 = sst [smem:[#allocation15_spill]] %s5923_s16 }
   0x5   :  { %21 = vsyncpa [#allocation5], 0  ;;  %s4766_s21 = smov 0   ;;  %s4768_s22 = smov 0  }
   0x6   :  { %s4770_s23 = smov 0  }
   0x7 LB: > { %5935 = sst [smem:[#allocation7_spill]] %s4665_s22  ;;  %s39_s25 = sadd.s32 1, %s4665_s22  ;;  %s4669_s23 = sphi %s4770_s23, %s27_s23   ;;  %s4665_s22 = sphi %s4768_s22, %s5964_s22   ;;  %s4661_s21 = sphi %s4766_s21, %s5963_s21  }
   0x8   : > { %5936 = sst [smem:[#allocation8_spill]] %s4669_s23  ;;  %p41_p0 = scmp.ge.s32.totalorder %s39_s25, 2 }
   0x9   : > { %p3561_p1 = scmp.ge.s32.totalorder %s4669_s23, 1  ;;  %p539_p2 = scmp.lt.s32.totalorder %s4669_s23, 3 }
   0xa   : > { %s5966_s25 = smov (%p41_p0, %s39_s25), 0 }
   0xb   : > { %5937 = sst [smem:[#allocation9_spill]] %s5966_s25  ;;  %p540_p3 = pnand %p3561_p1, %p539_p2 }
   0xd   : > { %543 = sbr.rel (%p540_p3) target bundleno = 1713 (0x6b1), region = 84 }
  0x12   : > { %p637_p4 = scmp.lt.s32.totalorder %s4661_s21, 1  ;;  %p654_p5 = scmp.eq.s32.totalorder %s4661_s21, 0 }
  0x13   : > { %v663_v0 = vld [vmem:[%s5912_s5] sm:$0xf] (%p654_p5)  ;;  %vm675_vm0 = vcmask (%p654_p5), 1043456   ;;  %s5938_s17 = sld [smem:[#allocation12_spill]] (%p654_p5)  ;;  %v4671_v2 = vmov (%p654_p5), 0.0   ;;  %vm4672_vm1 = vmmov (%p654_p5), 0  }
  0x14   : > { %s4790_s26 = scalar_select %p637_p4, %s4661_s21, 1  ;;  %4063 = vmatprep.subr.bf16.mxu0 (%p654_p5), %v4671_v2  ;;  %v677_v3 = vsel (%p654_p5), %vm675_vm0, %v663_v0, 0  ;;  %4065 = vmatprep.mubr.msk.bf16.mxu0 (%p654_p5), %vm4672_vm1, %v4671_v2  ;;  %vm671_vm2 = vcmask (%p654_p5), 64512   ;;  %v3566_v6 = vld [vmem:[%s5913_s6] ss:$0 sm:$0xff] (%p654_p5) }
  0x15   : > { %659 = sbr.rel (!%p654_p5) target bundleno = 262 (0x106), region = 88  ;;  %4064 = vmatpush3.bf16.msra.mxu0 (%p654_p5), %v677_v3 }
  0x16   : > { %s4246_s27 = smul.u32 192, %s4790_s26  ;;  %s644_s30 = scalar_lea.vmem %s5917_s10, %s4790_s26 }
  0x17   : > { %s3816_s0 = sshll.u32 %s4790_s26, 7  ;;  %s652_s19 = scalar_lea.vmem %s5919_s12, %s4790_s26 }
  0x18   : > { %s4805_s25 = scalar_lea.vmem %s5916_s9, %s4246_s27  ;;  %s4810_s23 = scalar_lea.vmem %s5918_s11, %s3816_s0 }
  0x19   : > { %v660_v1 = vld [vmem:[%s5938_s17] sm:$0xff] (%p654_p5)  ;;  %v661_v4 = vld [vmem:[%s5938_s17 + $0x8] sm:$0xff] (%p654_p5) }
  0x1a   : > { %v662_v5 = vpack.c.bf16 %v661_v4, %v660_v1 }
  0x1c   : > { %4066 = vmatmul.mubr.msk.bf16.vlgmr.msra.gmra.mxu0 %vm671_vm2, %v662_v5 }
  0xdc   : > { %v713_v7 = vpop.f32.mrf.mxu0 }
  0xdd   : > { %v714_v8 = vadd.f32 %v3566_v6, %v713_v7 }
  0xde   : > { %v4067_v9 = vpop.f32.mrf.mxu0 }
  0xdf   : > { %v3568_v10 = vmul.f32 -1.442695, %v714_v8 }
  0xe0   : > { %v716_v11 = vpop.f32.mrf.mxu0 }
  0xe1   : > { %4287 = vpow2.f32 %v3568_v10  ;;  %v717_v12 = vadd.f32 %v3566_v6, %v716_v11 }
  0xe2   : > { %v4068_v13 = vpop.f32.mrf.mxu0 }
  0xe3   : > { %v3569_v14 = vmul.f32 -1.442695, %v717_v12 }
  0xe5   : > { %4289 = vpow2.f32 %v3569_v14 }
  0xee   : > { %v4288_v15 = vpop.eup %4287 }
  0xef   : > { %v726_v16 = vadd.f32 1.0, %v4288_v15 }
  0xf1   : > { %4291 = vrcp.f32 %v726_v16 }
  0xf2   : > { %v4290_v17 = vpop.eup %4289 }
  0xf3   : > { %v727_v18 = vadd.f32 1.0, %v4290_v17 }
  0xf5   : > { %4293 = vrcp.f32 %v727_v18 }
  0xfe   : > { %v4292_v19 = vpop.eup %4291 }
  0xff   : > { %v732_v20 = vmul.f32 %v4292_v19, %v714_v8 }
 0x101   : > { %734 = vst [vmem:[#allocation2] sm:$0xff] %v732_v20 }
 0x102   : > { %v4294_v21 = vpop.eup %4293 }
 0x103   : > { %v733_v22 = vmul.f32 %v4294_v21, %v717_v12 }
 0x105   : > { %735 = vst [vmem:[#allocation2 + $0x8] sm:$0xff] %v733_v22 }
 0x106 PF: > { %v1483_v23 = vld [vmem:[%s5910_s3] sm:$0xff]  ;;  %v4673_v25 = vmov 0   ;;  %vm849_vm3 = vcmask 1043456   ;;  %v1484_v26 = vld [vmem:[%s5910_s3 + $0x8] sm:$0xff]  ;;  %vm800_vm4 = vcmask 64512   ;;  %v746_v32 = vld [vmem:[%s5908_s1 + $0x10] sm:$0xff] }
 0x107   : > { %v1243_v24 = vld [vmem:[%s5909_s2] sm:$0xff]  ;;  %4296 = vset.pattern.permute.xlu1 %v4673_v25  ;;  %4295 = vset.pattern.permute.xlu0 %v4673_v25  ;;  %v1244_v27 = vld [vmem:[%s5909_s2 + $0x8] sm:$0xff]  ;;  %v747_v33 = vld [vmem:[%s5908_s1 + $0x18] sm:$0xff]  ;;  %vm1746_vm9 = vcmask 130048   ;;  %p3221_p6 = scmp.eq.s32.totalorder %s4661_s21, 1 }
 0x108   : > { %1516 = vperm.xlu0 %4295, %v1483_v23   ;;  %1276 = vperm.xlu1 %4296, %v1243_v24   ;;  %v792_v28 = vld [vmem:[%s5914_s7] sm:$0xf]  ;;  %v745_v31 = vld [vmem:[%s5908_s1 + $0x8] sm:$0xff]  ;;  %v1485_v34 = vld [vmem:[%s5910_s3 + $0x10] sm:$0xff]  ;;  %v777_v37 = vpack.c.bf16 %v747_v33, %v746_v32  ;;  %s5955_s16 = sld [smem:[#allocation13_spill]] (%p3221_p6) }
 0x109   : > { %4245 = vmatprep.subr.msk.bf16.mxu0 %vm849_vm3, %v792_v28  ;;  %v851_v29 = vsel %vm849_vm3, %v792_v28, 0  ;;  %v744_v30 = vld [vmem:[%s5908_s1] sm:$0xff]  ;;  %v1486_v35 = vld [vmem:[%s5910_s3 + $0x18] sm:$0xff]  ;;  %v749_v39 = vld [vmem:[%s5908_s1 + $0x28] sm:$0xff]  ;;  %s5956_s18 = sld [smem:[#allocation12_spill]] (%p3221_p6) }
 0x10a   : > { %4070 = vmatpush3.bf16.msra.mxu0 %v851_v29  ;;  %v776_v36 = vpack.c.bf16 %v745_v31, %v744_v30  ;;  %v748_v38 = vld [vmem:[%s5908_s1 + $0x20] sm:$0xff]  ;;  %v1245_v41 = vld [vmem:[%s5909_s2 + $0x10] sm:$0xff]  ;;  %v1246_v42 = vld [vmem:[%s5909_s2 + $0x18] sm:$0xff] }
 0x10b   : > { %v778_v40 = vpack.c.bf16 %v749_v39, %v748_v38  ;;  %v750_v43 = vld [vmem:[%s5908_s1 + $0x30] sm:$0xff]  ;;  %v751_v44 = vld [vmem:[%s5908_s1 + $0x38] sm:$0xff]  ;;  %v752_v45 = vld [vmem:[%s5908_s1 + $0x40] sm:$0xff] }
 0x10c   : > { %1519 = vperm.xlu0 %4295, %v1484_v26   ;;  %1279 = vperm.xlu1 %4296, %v1244_v27   ;;  %v753_v46 = vld [vmem:[%s5908_s1 + $0x48] sm:$0xff]  ;;  %v1487_v47 = vld [vmem:[%s5910_s3 + $0x20] sm:$0xff]  ;;  %v779_v49 = vpack.c.bf16 %v751_v44, %v750_v43  ;;  %v754_v53 = vld [vmem:[%s5908_s1 + $0x50] sm:$0xff] }
 0x10d   : > { %4071 = vmatprep.mubr.msk.bf16.mxu0 %vm800_vm4, %v776_v36  ;;  %v1488_v48 = vld [vmem:[%s5910_s3 + $0x28] sm:$0xff]  ;;  %v780_v50 = vpack.c.bf16 %v753_v46, %v752_v45  ;;  %v1247_v51 = vld [vmem:[%s5909_s2 + $0x20] sm:$0xff]  ;;  %v755_v54 = vld [vmem:[%s5908_s1 + $0x58] sm:$0xff] }
 0x10e   : > { %4072 = vmatmul.mubr.msk.bf16.vlgmr.msra.gmra.mxu0 %vm800_vm4, %v777_v37  ;;  %v1248_v52 = vld [vmem:[%s5909_s2 + $0x28] sm:$0xff]  ;;  %v756_v55 = vld [vmem:[%s5908_s1 + $0x60] sm:$0xff]  ;;  %v1489_v57 = vld [vmem:[%s5910_s3 + $0x30] sm:$0xff]  ;;  %v781_v59 = vpack.c.bf16 %v755_v54, %v754_v53 }
 0x10f   : > { %4075 = vmatprep.mubr.msk.bf16.mxu0 %vm800_vm4, %v778_v40  ;;  %v757_v56 = vld [vmem:[%s5908_s1 + $0x68] sm:$0xff]  ;;  %v1490_v58 = vld [vmem:[%s5910_s3 + $0x38] sm:$0xff]  ;;  %v1249_v61 = vld [vmem:[%s5909_s2 + $0x30] sm:$0xff] }
 0x110   : > { %1522 = vperm.xlu0 %4295, %v1485_v34   ;;  %1525 = vperm.xlu1 %4296, %v1486_v35   ;;  %v782_v60 = vpack.c.bf16 %v757_v56, %v756_v55  ;;  %v1250_v62 = vld [vmem:[%s5909_s2 + $0x38] sm:$0xff]  ;;  %v758_v63 = vld [vmem:[%s5908_s1 + $0x70] sm:$0xff]  ;;  %v760_v1 = vld [vmem:[%s5908_s1 + $0x80] sm:$0xff] }
 0x111   : > { %v759_v0 = vld [vmem:[%s5908_s1 + $0x78] sm:$0xff]  ;;  %v761_v2 = vld [vmem:[%s5908_s1 + $0x88] sm:$0xff]  ;;  %v741_v3 = vld [vmem:[#allocation2] sm:$0xff] }
 0x112   : > { %v742_v4 = vld [vmem:[#allocation2 + $0x8] sm:$0xff]  ;;  %v1491_v6 = vld [vmem:[%s5910_s3 + $0x40] sm:$0xff]  ;;  %v783_v8 = vpack.c.bf16 %v759_v0, %v758_v63  ;;  %v784_v9 = vpack.c.bf16 %v761_v2, %v760_v1  ;;  %v762_v12 = vld [vmem:[%s5908_s1 + $0x90] sm:$0xff] }
 0x113   : > { %v4938_v5 = vpack.c.bf16 %v742_v4, %v741_v3  ;;  %v1492_v7 = vld [vmem:[%s5910_s3 + $0x48] sm:$0xff]  ;;  %v1251_v10 = vld [vmem:[%s5909_s2 + $0x40] sm:$0xff]  ;;  %v763_v13 = vld [vmem:[%s5908_s1 + $0x98] sm:$0xff] }
 0x114   : > { %1282 = vperm.xlu0 %4295, %v1245_v41   ;;  %1285 = vperm.xlu1 %4296, %v1246_v42   ;;  %v1252_v11 = vld [vmem:[%s5909_s2 + $0x48] sm:$0xff]  ;;  %v764_v14 = vld [vmem:[%s5908_s1 + $0xa0] sm:$0xff]  ;;  %v1493_v16 = vld [vmem:[%s5910_s3 + $0x50] sm:$0xff]  ;;  %v785_v18 = vpack.c.bf16 %v763_v13, %v762_v12  ;;  %v1238_v13 = vlaneseq }
 0x115   : > { %5939 = vst [vmem:[#allocation10_spill] sm:$0xff] %v4938_v5  ;;  %4137 = vmatprep.subr.bf16.mxu0 %v4938_v5  ;;  %4103 = vmatprep.subr.bf16.mxu1 %v4938_v5  ;;  %v765_v15 = vld [vmem:[%s5908_s1 + $0xa8] sm:$0xff]  ;;  %v1494_v17 = vld [vmem:[%s5910_s3 + $0x58] sm:$0xff]  ;;  %v1253_v20 = vld [vmem:[%s5909_s2 + $0x50] sm:$0xff] }
 0x116   : > { %4076 = vmatmul.mubr.msk.bf16.gmra.mxu0 %vm800_vm4, %v779_v49  ;;  %4104 = vmatpush3.bf16.msra.mxu1 %v4938_v5  ;;  %v786_v19 = vpack.c.bf16 %v765_v15, %v764_v14  ;;  %v1254_v21 = vld [vmem:[%s5909_s2 + $0x58] sm:$0xff]  ;;  %v766_v22 = vld [vmem:[%s5908_s1 + $0xb0] sm:$0xff]  ;;  %v768_v24 = vld [vmem:[%s5908_s1 + $0xc0] sm:$0xff] }
 0x117   : > { %4079 = vmatprep.mubr.msk.bf16.mxu0 %vm800_vm4, %v780_v50  ;;  %4138 = vmatpush3.bf16.msra.mxu0 %v4938_v5  ;;  %v767_v23 = vld [vmem:[%s5908_s1 + $0xb8] sm:$0xff]  ;;  %v769_v25 = vld [vmem:[%s5908_s1 + $0xc8] sm:$0xff]  ;;  %v1495_v26 = vld [vmem:[%s5910_s3 + $0x60] sm:$0xff] }
 0x118   : > { %1528 = vperm.xlu0 %4295, %v1487_v47   ;;  %1531 = vperm.xlu1 %4296, %v1488_v48   ;;  %v1496_v27 = vld [vmem:[%s5910_s3 + $0x68] sm:$0xff]  ;;  %v787_v28 = vpack.c.bf16 %v767_v23, %v766_v22  ;;  %v788_v29 = vpack.c.bf16 %v769_v25, %v768_v24  ;;  %v1255_v30 = vld [vmem:[%s5909_s2 + $0x60] sm:$0xff]  ;;  %v770_v32 = vld [vmem:[%s5908_s1 + $0xd0] sm:$0xff] }
 0x119   : > { %v1256_v31 = vld [vmem:[%s5909_s2 + $0x68] sm:$0xff]  ;;  %v771_v33 = vld [vmem:[%s5908_s1 + $0xd8] sm:$0xff]  ;;  %v772_v34 = vld [vmem:[%s5908_s1 + $0xe0] sm:$0xff] }
 0x11a   : > { %v773_v35 = vld [vmem:[%s5908_s1 + $0xe8] sm:$0xff]  ;;  %v1497_v36 = vld [vmem:[%s5910_s3 + $0x70] sm:$0xff]  ;;  %v1498_v37 = vld [vmem:[%s5910_s3 + $0x78] sm:$0xff]  ;;  %v789_v38 = vpack.c.bf16 %v771_v33, %v770_v32 }
 0x11b   : > { %v790_v39 = vpack.c.bf16 %v773_v35, %v772_v34  ;;  %v1257_v40 = vld [vmem:[%s5909_s2 + $0x70] sm:$0xff]  ;;  %v1258_v41 = vld [vmem:[%s5909_s2 + $0x78] sm:$0xff]  ;;  %v1499_v44 = vld [vmem:[%s5910_s3 + $0x80] sm:$0xff] }
 0x11c   : > { %1288 = vperm.xlu0 %4295, %v1247_v51   ;;  %1291 = vperm.xlu1 %4296, %v1248_v52   ;;  %v774_v42 = vld [vmem:[%s5908_s1 + $0xf0] sm:$0xff]  ;;  %v775_v43 = vld [vmem:[%s5908_s1 + $0xf8] sm:$0xff]  ;;  %v1500_v45 = vld [vmem:[%s5910_s3 + $0x88] sm:$0xff] }
 0x11d   : > { %v791_v46 = vpack.c.bf16 %v775_v43, %v774_v42  ;;  %v1259_v47 = vld [vmem:[%s5909_s2 + $0x80] sm:$0xff]  ;;  %v1260_v48 = vld [vmem:[%s5909_s2 + $0x88] sm:$0xff]  ;;  %v1501_v49 = vld [vmem:[%s5910_s3 + $0x90] sm:$0xff] }
 0x11e   : > { %4080 = vmatmul.mubr.msk.bf16.gmra.mxu0 %vm800_vm4, %v781_v59  ;;  %v1502_v50 = vld [vmem:[%s5910_s3 + $0x98] sm:$0xff]  ;;  %v1261_v51 = vld [vmem:[%s5909_s2 + $0x90] sm:$0xff]  ;;  %v1503_v53 = vld [vmem:[%s5910_s3 + $0xa0] sm:$0xff] }
 0x11f   : > { %4083 = vmatprep.mubr.msk.bf16.mxu0 %vm800_vm4, %v782_v60  ;;  %v1262_v52 = vld [vmem:[%s5909_s2 + $0x98] sm:$0xff]  ;;  %v1504_v54 = vld [vmem:[%s5910_s3 + $0xa8] sm:$0xff]  ;;  %v1263_v55 = vld [vmem:[%s5909_s2 + $0xa0] sm:$0xff] }
 0x120   : > { %1534 = vperm.xlu0 %4295, %v1489_v57   ;;  %1537 = vperm.xlu1 %4296, %v1490_v58   ;;  %v1264_v56 = vld [vmem:[%s5909_s2 + $0xa8] sm:$0xff]  ;;  %v1505_v57 = vld [vmem:[%s5910_s3 + $0xb0] sm:$0xff]  ;;  %v1506_v58 = vld [vmem:[%s5910_s3 + $0xb8] sm:$0xff] }
 0x121   : > { %v1265_v59 = vld [vmem:[%s5909_s2 + $0xb0] sm:$0xff]  ;;  %v1266_v60 = vld [vmem:[%s5909_s2 + $0xb8] sm:$0xff]  ;;  %v1267_v63 = vld [vmem:[%s5909_s2 + $0xc0] sm:$0xff] }
 0x122   : > { %v1268_v0 = vld [vmem:[%s5909_s2 + $0xc8] sm:$0xff]  ;;  %v1509_v1 = vld [vmem:[%s5910_s3 + $0xd0] sm:$0xff]  ;;  %v1510_v2 = vld [vmem:[%s5910_s3 + $0xd8] sm:$0xff] }
 0x123   : > { %v1269_v3 = vld [vmem:[%s5909_s2 + $0xd0] sm:$0xff]  ;;  %v1270_v4 = vld [vmem:[%s5909_s2 + $0xd8] sm:$0xff] }
 0x124   : > { %1294 = vperm.xlu0 %4295, %v1249_v61   ;;  %1297 = vperm.xlu1 %4296, %v1250_v62   ;;  %v1507_v61 = vld [vmem:[%s5910_s3 + $0xc0] sm:$0xff]  ;;  %v1508_v62 = vld [vmem:[%s5910_s3 + $0xc8] sm:$0xff]  ;;  %v1514_v12 = vld [vmem:[%s5910_s3 + $0xf8] sm:$0xff] }
 0x125   : > { %v1273_v14 = vld [vmem:[%s5909_s2 + $0xf0] sm:$0xff]  ;;  %v1274_v15 = vld [vmem:[%s5909_s2 + $0xf8] sm:$0xff] }
 0x126   : > { %4084 = vmatmul.mubr.msk.bf16.gmra.mxu0 %vm800_vm4, %v783_v8  ;;  %v1512_v8 = vld [vmem:[%s5910_s3 + $0xe8] sm:$0xff]  ;;  %v4298_v33 = vld [vmem:[%s4805_s25 + $0xb0] sm:$0xff]  }
 0x127   : > { %4087 = vmatprep.mubr.msk.bf16.mxu0 %vm800_vm4, %v784_v9  ;;  %v1271_v9 = vld [vmem:[%s5909_s2 + $0xe0] sm:$0xff] }
 0x128   : > { %1540 = vperm.xlu0 %4295, %v1491_v6   ;;  %1543 = vperm.xlu1 %4296, %v1492_v7   ;;  %v4297_v6 = vld [vmem:[%s4805_s25 + $0xb8] sm:$0xff]   ;;  %v1511_v7 = vld [vmem:[%s5910_s3 + $0xe0] sm:$0xff] }
 0x129   : > { %4171 = vmatprep.subr.bf16.mxu0 %v4297_v6 }
 0x12c   : > { %1300 = vperm.xlu0 %4295, %v1251_v10   ;;  %1303 = vperm.xlu1 %4296, %v1252_v11   ;;  %v1272_v10 = vld [vmem:[%s5909_s2 + $0xe8] sm:$0xff]  ;;  %v1513_v11 = vld [vmem:[%s5910_s3 + $0xf0] sm:$0xff] }
 0x12e   : > { %4088 = vmatmul.mubr.msk.bf16.gmra.mxu0 %vm800_vm4, %v785_v18 }
 0x12f   : > { %4091 = vmatprep.mubr.msk.bf16.mxu0 %vm800_vm4, %v786_v19 }
 0x130   : > { %1546 = vperm.xlu0 %4295, %v1493_v16   ;;  %1549 = vperm.xlu1 %4296, %v1494_v17   ;;  %v5141_v16 = vand.u32 127, %v1238_v13 }
 0x134   : > { %1306 = vperm.xlu0 %4295, %v1253_v20   ;;  %1309 = vperm.xlu1 %4296, %v1254_v21   ;;  %v4674_v21 = vmov 0.0  }
 0x136   : > { %4092 = vmatmul.mubr.msk.bf16.gmra.mxu0 %vm800_vm4, %v787_v28 }
 0x137   : > { %4095 = vmatprep.mubr.msk.bf16.mxu0 %vm800_vm4, %v788_v29 }
 0x138   : > { %1552 = vperm.xlu0 %4295, %v1495_v26   ;;  %1555 = vperm.xlu1 %4296, %v1496_v27  }
 0x13c   : > { %1312 = vperm.xlu0 %4295, %v1255_v30   ;;  %1315 = vperm.xlu1 %4296, %v1256_v31  }
 0x13e   : > { %4096 = vmatmul.mubr.msk.bf16.gmra.mxu0 %vm800_vm4, %v789_v38 }
 0x13f   : > { %4099 = vmatprep.mubr.msk.bf16.mxu0 %vm800_vm4, %v790_v39  ;;  %v4299_v39 = vld [vmem:[%s4805_s25 + $0xa8] sm:$0xff]  }
 0x140   : > { %1558 = vperm.xlu0 %4295, %v1497_v36   ;;  %1561 = vperm.xlu1 %4296, %v1498_v37  }
 0x144   : > { %1318 = vperm.xlu0 %4295, %v1257_v40   ;;  %1321 = vperm.xlu1 %4296, %v1258_v41  }
 0x146   : > { %4100 = vmatmul.mubr.msk.bf16.gmra.mxu0 %vm800_vm4, %v791_v46 }
 0x148   : > { %1564 = vperm.xlu0 %4295, %v1499_v44   ;;  %1567 = vperm.xlu1 %4296, %v1500_v45   ;;  %v4300_v45 = vld [vmem:[%s4805_s25 + $0xa0] sm:$0xff]  }
 0x14c   : > { %1324 = vperm.xlu0 %4295, %v1259_v47   ;;  %1327 = vperm.xlu1 %4296, %v1260_v48  }
 0x150   : > { %1570 = vperm.xlu0 %4295, %v1501_v49   ;;  %1573 = vperm.xlu1 %4296, %v1502_v50  }
 0x154   : > { %1330 = vperm.xlu0 %4295, %v1261_v51   ;;  %1333 = vperm.xlu1 %4296, %v1262_v52   ;;  %v4301_v51 = vld [vmem:[%s4805_s25 + $0x98] sm:$0xff]  }
 0x158   : > { %1576 = vperm.xlu0 %4295, %v1503_v53   ;;  %1579 = vperm.xlu1 %4296, %v1504_v54  }
 0x15c   : > { %1336 = vperm.xlu0 %4295, %v1263_v55   ;;  %1339 = vperm.xlu1 %4296, %v1264_v56  }
 0x160   : > { %1582 = vperm.xlu0 %4295, %v1505_v57   ;;  %1585 = vperm.xlu1 %4296, %v1506_v58   ;;  %v4302_v57 = vld [vmem:[%s4805_s25 + $0x90] sm:$0xff]  }
 0x164   : > { %1342 = vperm.xlu0 %4295, %v1265_v59   ;;  %1345 = vperm.xlu1 %4296, %v1266_v60  }
 0x168   : > { %1588 = vperm.xlu0 %4295, %v1507_v61   ;;  %1591 = vperm.xlu1 %4296, %v1508_v62  }
 0x16c   : > { %1348 = vperm.xlu0 %4295, %v1267_v63   ;;  %1351 = vperm.xlu1 %4296, %v1268_v0   ;;  %v4303_v63 = vld [vmem:[%s4805_s25 + $0x88] sm:$0xff]  }
 0x170   : > { %1594 = vperm.xlu0 %4295, %v1509_v1   ;;  %1597 = vperm.xlu1 %4296, %v1510_v2  }
 0x174   : > { %1354 = vperm.xlu0 %4295, %v1269_v3   ;;  %1357 = vperm.xlu1 %4296, %v1270_v4  }
 0x178   : > { %1600 = vperm.xlu0 %4295, %v1511_v7   ;;  %1603 = vperm.xlu1 %4296, %v1512_v8  }
 0x17c   : > { %1360 = vperm.xlu0 %4295, %v1271_v9   ;;  %1363 = vperm.xlu1 %4296, %v1272_v10  }
 0x180   : > { %1606 = vperm.xlu0 %4295, %v1513_v11   ;;  %1609 = vperm.xlu1 %4296, %v1514_v12  }
 0x183   : > { %v1517_v17 = vpop.permute.xlu0 %1516  ;;  %v1277_v18 = vpop.permute.xlu1 %1276 }
 0x184   : > { %1366 = vperm.xlu0 %4295, %v1273_v14   ;;  %1369 = vperm.xlu1 %4296, %v1274_v15   ;;  %vm1611_vm5 = vcmp.eq.s32.totalorder %v5141_v16, %v1517_v17  ;;  %vm1371_vm6 = vcmp.eq.s32.totalorder %v5141_v16, %v1277_v18 }
 0x185   : > { %v3651_v22 = vsel %vm1611_vm5, 1.0, %v4674_v21  ;;  %v3619_v23 = vsel %vm1371_vm6, 1.0, %v4674_v21 }
 0x187   : > { %v1520_v19 = vpop.permute.xlu0 %1519  ;;  %v1280_v20 = vpop.permute.xlu1 %1279 }
 0x188   : > { %vm1612_vm7 = vcmp.eq.s32.totalorder %v5141_v16, %v1520_v19  ;;  %vm1372_vm8 = vcmp.eq.s32.totalorder %v5141_v16, %v1280_v20 }
 0x189   : > { %v3652_v24 = vsel %vm1612_vm7, 1.0, %v4674_v21  ;;  %v3620_v25 = vsel %vm1372_vm8, 1.0, %v4674_v21 }
 0x18a   : > { %v1707_v26 = vpack.c.bf16 %v3652_v24, %v3651_v22  ;;  %v1467_v27 = vpack.c.bf16 %v3620_v25, %v3619_v23 }
 0x18b   : > { %v1523_v28 = vpop.permute.xlu0 %1522  ;;  %v1526_v29 = vpop.permute.xlu1 %1525 }
 0x18c   : > { %vm1613_vm10 = vcmp.eq.s32.totalorder %v5141_v16, %v1523_v28  ;;  %vm1614_vm11 = vcmp.eq.s32.totalorder %v5141_v16, %v1526_v29  ;;  %4105 = vmatprep.mubr.msk.bf16.mxu1 %vm1746_vm9, %v1467_v27  ;;  %4139 = vmatprep.mubr.msk.bf16.mxu0 %vm1746_vm9, %v1707_v26 }
 0x18d   : > { %v3653_v30 = vsel %vm1613_vm10, 1.0, %v4674_v21  ;;  %v3654_v31 = vsel %vm1614_vm11, 1.0, %v4674_v21 }
 0x18e   : > { %v1708_v32 = vpack.c.bf16 %v3654_v31, %v3653_v30 }
 0x18f   : > { %v1283_v34 = vpop.permute.xlu0 %1282  ;;  %v1286_v35 = vpop.permute.xlu1 %1285 }
 0x190   : > { %vm1373_vm12 = vcmp.eq.s32.totalorder %v5141_v16, %v1283_v34  ;;  %vm1374_vm13 = vcmp.eq.s32.totalorder %v5141_v16, %v1286_v35  ;;  %4140 = vmatmul.mubr.msk.bf16.vlgmr.msra.gmra.mxu0 %vm1746_vm9, %v1708_v32  ;;  %v4305_v32 = vld [vmem:[%s4805_s25 + $0x78] sm:$0xff]   ;;  %v4307_v34 = vld [vmem:[%s4805_s25 + $0x70] sm:$0xff]  }
 0x191   : > { %v3621_v36 = vsel %vm1373_vm12, 1.0, %v4674_v21  ;;  %v3622_v37 = vsel %vm1374_vm13, 1.0, %v4674_v21  ;;  %4172 = vmatpush3.bf16.msra.mxu0 %v4297_v6  ;;  %v4304_v6 = vld [vmem:[%s4805_s25 + $0x80] sm:$0xff]   ;;  %3872 = vmatprep.subr.bf16.mxu1 %v4305_v32 }
 0x192   : > { %v1468_v38 = vpack.c.bf16 %v3622_v37, %v3621_v36  ;;  %4173 = vmatprep.subr.bf16.mxu0 %v4298_v33 }
 0x193   : > { %v1529_v40 = vpop.permute.xlu0 %1528  ;;  %v1532_v41 = vpop.permute.xlu1 %1531 }
 0x194   : > { %vm1615_vm14 = vcmp.eq.s32.totalorder %v5141_v16, %v1529_v40  ;;  %vm1616_vm15 = vcmp.eq.s32.totalorder %v5141_v16, %v1532_v41  ;;  %4106 = vmatmul.mubr.msk.bf16.vlgmr.msra.gmra.mxu1 %vm1746_vm9, %v1468_v38  ;;  %v4308_v38 = vld [vmem:[%s4805_s25 + $0x30] sm:$0xff]   ;;  %v4309_v41 = vld [vmem:[%s4805_s25 + $0x68] sm:$0xff]  }
 0x195   : > { %v3655_v42 = vsel %vm1615_vm14, 1.0, %v4674_v21  ;;  %v3656_v43 = vsel %vm1616_vm15, 1.0, %v4674_v21  ;;  %4174 = vmatpush3.bf16.msra.mxu0 %v4298_v33  ;;  %v4306_v33 = vld [vmem:[%s4805_s25 + $0x38] sm:$0xff]  }
 0x196   : > { %v1709_v44 = vpack.c.bf16 %v3656_v43, %v3655_v42  ;;  %4175 = vmatprep.subr.bf16.mxu0 %v4299_v39  ;;  %3873 = vmatpush3.bf16.msra.mxu1 %v4306_v33 }
 0x197   : > { %v1289_v46 = vpop.permute.xlu0 %1288  ;;  %v1292_v47 = vpop.permute.xlu1 %1291  ;;  %3874 = vmatprep.subr.bf16.mxu1 %v4307_v34 }
 0x198   : > { %vm1375_vm0 = vcmp.eq.s32.totalorder %v5141_v16, %v1289_v46  ;;  %vm1376_vm1 = vcmp.eq.s32.totalorder %v5141_v16, %v1292_v47  ;;  %4143 = vmatprep.mubr.msk.bf16.mxu0 %vm1746_vm9, %v1709_v44 }
 0x199   : > { %v3623_v48 = vsel %vm1375_vm0, 1.0, %v4674_v21  ;;  %v3624_v49 = vsel %vm1376_vm1, 1.0, %v4674_v21  ;;  %4176 = vmatpush3.bf16.msra.mxu0 %v4299_v39 }
 0x19a   : > { %v1469_v50 = vpack.c.bf16 %v3624_v49, %v3623_v48  ;;  %4177 = vmatprep.subr.bf16.mxu0 %v4300_v45  ;;  %3875 = vmatpush3.bf16.msra.mxu1 %v4308_v38  ;;  %v4311_v48 = vld [vmem:[%s4805_s25 + $0x60] sm:$0xff]  }
 0x19b   : > { %v1535_v52 = vpop.permute.xlu0 %1534  ;;  %v1538_v53 = vpop.permute.xlu1 %1537  ;;  %3876 = vmatprep.subr.bf16.mxu1 %v4309_v41 }
 0x19c   : > { %vm1617_vm2 = vcmp.eq.s32.totalorder %v5141_v16, %v1535_v52  ;;  %vm1618_vm5 = vcmp.eq.s32.totalorder %v5141_v16, %v1538_v53  ;;  %4109 = vmatprep.mubr.msk.bf16.mxu1 %vm1746_vm9, %v1469_v50  ;;  %v4312_v52 = vld [vmem:[%s4805_s25 + $0x20] sm:$0xff]  }
 0x19d   : > { %v3657_v54 = vsel %vm1617_vm2, 1.0, %v4674_v21  ;;  %v3658_v55 = vsel %vm1618_vm5, 1.0, %v4674_v21  ;;  %4178 = vmatpush3.bf16.msra.mxu0 %v4300_v45  ;;  %v4310_v45 = vld [vmem:[%s4805_s25 + $0x28] sm:$0xff]  }
 0x19e   : > { %v1710_v56 = vpack.c.bf16 %v3658_v55, %v3657_v54  ;;  %4179 = vmatprep.subr.bf16.mxu0 %v4301_v51  ;;  %3877 = vmatpush3.bf16.msra.mxu1 %v4310_v45  ;;  %v4313_v55 = vld [vmem:[%s4805_s25 + $0x58] sm:$0xff]  }
 0x19f   : > { %v1295_v58 = vpop.permute.xlu0 %1294  ;;  %v1298_v59 = vpop.permute.xlu1 %1297  ;;  %3878 = vmatprep.subr.bf16.mxu1 %v4311_v48 }
 0x1a0   : > { %vm1377_vm6 = vcmp.eq.s32.totalorder %v5141_v16, %v1295_v58  ;;  %vm1378_vm7 = vcmp.eq.s32.totalorder %v5141_v16, %v1298_v59  ;;  %4144 = vmatmul.mubr.msk.bf16.gmra.mxu0 %vm1746_vm9, %v1710_v56  ;;  %v4314_v59 = vld [vmem:[%s4805_s25 + $0x18] sm:$0xff]  }
 0x1a1   : > { %v3625_v60 = vsel %vm1377_vm6, 1.0, %v4674_v21  ;;  %v3626_v61 = vsel %vm1378_vm7, 1.0, %v4674_v21  ;;  %4180 = vmatpush3.bf16.msra.mxu0 %v4301_v51 }
 0x1a2   : > { %v1470_v62 = vpack.c.bf16 %v3626_v61, %v3625_v60  ;;  %4181 = vmatprep.subr.bf16.mxu0 %v4302_v57  ;;  %3879 = vmatpush3.bf16.msra.mxu1 %v4312_v52 }
 0x1a3   : > { %v1541_v0 = vpop.permute.xlu0 %1540  ;;  %v1544_v1 = vpop.permute.xlu1 %1543  ;;  %3880 = vmatprep.subr.bf16.mxu1 %v4313_v55 }
 0x1a4   : > { %vm1619_vm8 = vcmp.eq.s32.totalorder %v5141_v16, %v1541_v0  ;;  %vm1620_vm10 = vcmp.eq.s32.totalorder %v5141_v16, %v1544_v1  ;;  %4110 = vmatmul.mubr.msk.bf16.gmra.mxu1 %vm1746_vm9, %v1470_v62 }
 0x1a5   : > { %v3659_v2 = vsel %vm1619_vm8, 1.0, %v4674_v21  ;;  %v3660_v3 = vsel %vm1620_vm10, 1.0, %v4674_v21  ;;  %4182 = vmatpush3.bf16.msra.mxu0 %v4302_v57 }
 0x1a6   : > { %v1711_v4 = vpack.c.bf16 %v3660_v3, %v3659_v2  ;;  %4183 = vmatprep.subr.bf16.mxu0 %v4303_v63  ;;  %3881 = vmatpush3.bf16.msra.mxu1 %v4314_v59 }
 0x1a7   : > { %v1301_v7 = vpop.permute.xlu0 %1300  ;;  %v1304_v8 = vpop.permute.xlu1 %1303 }
 0x1a8   : > { %vm1379_vm11 = vcmp.eq.s32.totalorder %v5141_v16, %v1301_v7  ;;  %vm1380_vm12 = vcmp.eq.s32.totalorder %v5141_v16, %v1304_v8  ;;  %4147 = vmatprep.mubr.msk.bf16.mxu0 %vm1746_vm9, %v1711_v4 }
 0x1a9   : > { %v3627_v9 = vsel %vm1379_vm11, 1.0, %v4674_v21  ;;  %v3628_v10 = vsel %vm1380_vm12, 1.0, %v4674_v21  ;;  %4184 = vmatpush3.bf16.msra.mxu0 %v4303_v63 }
 0x1aa   : > { %v1471_v11 = vpack.c.bf16 %v3628_v10, %v3627_v9  ;;  %4185 = vmatprep.subr.bf16.mxu0 %v4304_v6  ;;  %v5257_v9 = vld [vmem:[%s5915_s8] ss:$0 sm:$0xff]  ;;  %v4315_v10 = vld [vmem:[%s4805_s25 + $0x50] sm:$0xff]  }
 0x1ab   : > { %v1547_v12 = vpop.permute.xlu0 %1546  ;;  %v1550_v14 = vpop.permute.xlu1 %1549  ;;  %3882 = vmatprep.subr.bf16.mxu1 %v4315_v10 }
 0x1ac   : > { %vm1621_vm13 = vcmp.eq.s32.totalorder %v5141_v16, %v1547_v12  ;;  %vm1622_vm14 = vcmp.eq.s32.totalorder %v5141_v16, %v1550_v14  ;;  %4113 = vmatprep.mubr.msk.bf16.mxu1 %vm1746_vm9, %v1471_v11  ;;  %v4316_v11 = vld [vmem:[%s4805_s25 + $0x10] sm:$0xff]  }
 0x1ad   : > { %v3661_v15 = vsel %vm1621_vm13, 1.0, %v4674_v21  ;;  %v3662_v17 = vsel %vm1622_vm14, 1.0, %v4674_v21  ;;  %4186 = vmatpush3.bf16.msra.mxu0 %v4304_v6  ;;  %3883 = vmatpush3.bf16.msra.mxu1 %v4316_v11 }
 0x1ae   : > { %v1712_v18 = vpack.c.bf16 %v3662_v17, %v3661_v15 }
 0x1af   : > { %v1307_v19 = vpop.permute.xlu0 %1306  ;;  %v1310_v20 = vpop.permute.xlu1 %1309 }
 0x1b0   : > { %vm1381_vm15 = vcmp.eq.s32.totalorder %v5141_v16, %v1307_v19  ;;  %vm1382_vm0 = vcmp.eq.s32.totalorder %v5141_v16, %v1310_v20  ;;  %4148 = vmatmul.mubr.msk.bf16.gmra.mxu0 %vm1746_vm9, %v1712_v18 }
 0x1b1   : > { %v3629_v22 = vsel %vm1381_vm15, 1.0, %v4674_v21  ;;  %v3630_v23 = vsel %vm1382_vm0, 1.0, %v4674_v21 }
 0x1b2   : > { %v1472_v24 = vpack.c.bf16 %v3630_v23, %v3629_v22  ;;  %v4317_v22 = vld [vmem:[%s4805_s25 + $0x48] sm:$0xff]  }
 0x1b3   : > { %v1553_v25 = vpop.permute.xlu0 %1552  ;;  %v1556_v26 = vpop.permute.xlu1 %1555  ;;  %3884 = vmatprep.subr.bf16.mxu1 %v4317_v22 }
 0x1b4   : > { %vm1623_vm1 = vcmp.eq.s32.totalorder %v5141_v16, %v1553_v25  ;;  %vm1624_vm2 = vcmp.eq.s32.totalorder %v5141_v16, %v1556_v26  ;;  %4114 = vmatmul.mubr.msk.bf16.gmra.mxu1 %vm1746_vm9, %v1472_v24  ;;  %v4318_v25 = vld [vmem:[%s4805_s25 + $0x8] sm:$0xff]  }
 0x1b5   : > { %v3663_v27 = vsel %vm1623_vm1, 1.0, %v4674_v21  ;;  %v3664_v28 = vsel %vm1624_vm2, 1.0, %v4674_v21  ;;  %3885 = vmatpush3.bf16.msra.mxu1 %v4318_v25 }
 0x1b6   : > { %v1713_v29 = vpack.c.bf16 %v3664_v28, %v3663_v27 }
 0x1b7   : > { %v1313_v30 = vpop.permute.xlu0 %1312  ;;  %v1316_v31 = vpop.permute.xlu1 %1315 }
 0x1b8   : > { %vm1383_vm5 = vcmp.eq.s32.totalorder %v5141_v16, %v1313_v30  ;;  %vm1384_vm6 = vcmp.eq.s32.totalorder %v5141_v16, %v1316_v31  ;;  %4151 = vmatprep.mubr.msk.bf16.mxu0 %vm1746_vm9, %v1713_v29 }
 0x1b9   : > { %v3631_v35 = vsel %vm1383_vm5, 1.0, %v4674_v21  ;;  %v3632_v36 = vsel %vm1384_vm6, 1.0, %v4674_v21 }
 0x1ba   : > { %v1473_v37 = vpack.c.bf16 %v3632_v36, %v3631_v35  ;;  %v4319_v35 = vld [vmem:[%s4805_s25 + $0x40] sm:$0xff]  }
 0x1bb   : > { %v1559_v39 = vpop.permute.xlu0 %1558  ;;  %v1562_v40 = vpop.permute.xlu1 %1561  ;;  %3886 = vmatprep.subr.bf16.mxu1 %v4319_v35 }
 0x1bc   : > { %vm1625_vm7 = vcmp.eq.s32.totalorder %v5141_v16, %v1559_v39  ;;  %vm1626_vm8 = vcmp.eq.s32.totalorder %v5141_v16, %v1562_v40  ;;  %4117 = vmatprep.mubr.msk.bf16.mxu1 %vm1746_vm9, %v1473_v37  ;;  %v4320_v37 = vld [vmem:[%s4805_s25] sm:$0xff]  }
 0x1bd   : > { %v3665_v42 = vsel %vm1625_vm7, 1.0, %v4674_v21  ;;  %v3666_v43 = vsel %vm1626_vm8, 1.0, %v4674_v21  ;;  %3887 = vmatpush3.bf16.msra.mxu1 %v4320_v37 }
 0x1be   : > { %v1714_v44 = vpack.c.bf16 %v3666_v43, %v3665_v42 }
 0x1bf   : > { %v1319_v46 = vpop.permute.xlu0 %1318  ;;  %v1322_v47 = vpop.permute.xlu1 %1321 }
 0x1c0   : > { %vm1385_vm10 = vcmp.eq.s32.totalorder %v5141_v16, %v1319_v46  ;;  %vm1386_vm11 = vcmp.eq.s32.totalorder %v5141_v16, %v1322_v47  ;;  %4152 = vmatmul.mubr.msk.bf16.gmra.mxu0 %vm1746_vm9, %v1714_v44 }
 0x1c1   : > { %v3633_v49 = vsel %vm1385_vm10, 1.0, %v4674_v21  ;;  %v3634_v50 = vsel %vm1386_vm11, 1.0, %v4674_v21 }
 0x1c2   : > { %v1474_v51 = vpack.c.bf16 %v3634_v50, %v3633_v49 }
 0x1c3   : > { %v1565_v53 = vpop.permute.xlu0 %1564  ;;  %v1568_v54 = vpop.permute.xlu1 %1567 }
 0x1c4   : > { %vm1627_vm12 = vcmp.eq.s32.totalorder %v5141_v16, %v1565_v53  ;;  %vm1628_vm13 = vcmp.eq.s32.totalorder %v5141_v16, %v1568_v54  ;;  %4118 = vmatmul.mubr.msk.bf16.gmra.mxu1 %vm1746_vm9, %v1474_v51 }
 0x1c5   : > { %v3667_v56 = vsel %vm1627_vm12, 1.0, %v4674_v21  ;;  %v3668_v57 = vsel %vm1628_vm13, 1.0, %v4674_v21 }
 0x1c6   : > { %v1715_v58 = vpack.c.bf16 %v3668_v57, %v3667_v56 }
 0x1c7   : > { %v1325_v60 = vpop.permute.xlu0 %1324  ;;  %v1328_v61 = vpop.permute.xlu1 %1327 }
 0x1c8   : > { %vm1387_vm14 = vcmp.eq.s32.totalorder %v5141_v16, %v1325_v60  ;;  %vm1388_vm15 = vcmp.eq.s32.totalorder %v5141_v16, %v1328_v61  ;;  %4155 = vmatprep.mubr.msk.bf16.mxu0 %vm1746_vm9, %v1715_v58 }
 0x1c9   : > { %v3635_v62 = vsel %vm1387_vm14, 1.0, %v4674_v21  ;;  %v3636_v63 = vsel %vm1388_vm15, 1.0, %v4674_v21 }
 0x1ca   : > { %v1475_v0 = vpack.c.bf16 %v3636_v63, %v3635_v62 }
 0x1cb   : > { %v1571_v1 = vpop.permute.xlu0 %1570  ;;  %v1574_v2 = vpop.permute.xlu1 %1573 }
 0x1cc   : > { %vm1629_vm0 = vcmp.eq.s32.totalorder %v5141_v16, %v1571_v1  ;;  %vm1630_vm1 = vcmp.eq.s32.totalorder %v5141_v16, %v1574_v2  ;;  %4121 = vmatprep.mubr.msk.bf16.mxu1 %vm1746_vm9, %v1475_v0 }
 0x1cd   : > { %v3669_v3 = vsel %vm1629_vm0, 1.0, %v4674_v21  ;;  %v3670_v4 = vsel %vm1630_vm1, 1.0, %v4674_v21 }
 0x1ce   : > { %v1716_v6 = vpack.c.bf16 %v3670_v4, %v3669_v3  ;;  %v4073_v15 = vpop.f32.mrf.mxu0 }
 0x1cf   : > { %v1331_v7 = vpop.permute.xlu0 %1330  ;;  %v1334_v8 = vpop.permute.xlu1 %1333  ;;  %v5267_v18 = vadd.f32 %v4073_v15, %v5257_v9 }
 0x1d0   : > { %vm1389_vm2 = vcmp.eq.s32.totalorder %v5141_v16, %v1331_v7  ;;  %vm1390_vm5 = vcmp.eq.s32.totalorder %v5141_v16, %v1334_v8  ;;  %4156 = vmatmul.mubr.msk.bf16.gmra.mxu0 %vm1746_vm9, %v1716_v6  ;;  %v887_v24 = vpop.f32.mrf.mxu0 }
 0x1d1   : > { %v3637_v12 = vsel %vm1389_vm2, 1.0, %v4674_v21  ;;  %v3638_v14 = vsel %vm1390_vm5, 1.0, %v4674_v21  ;;  %v3589_v23 = vmul.f32 -1.442695, %v5267_v18  ;;  %v5278_v28 = vadd.f32 %v5257_v9, %v887_v24 }
 0x1d2   : > { %v1476_v17 = vpack.c.bf16 %v3638_v14, %v3637_v12  ;;  %v4074_v30 = vpop.f32.mrf.mxu0 }
 0x1d3   : > { %v1577_v19 = vpop.permute.xlu0 %1576  ;;  %v1580_v20 = vpop.permute.xlu1 %1579  ;;  %4337 = vpow2.f32 %v3589_v23  ;;  %v3587_v33 = vmul.f32 -1.442695, %v5278_v28  ;;  %v5282_v34 = vadd.f32 %v4074_v30, %v5257_v9 }
 0x1d4   : > { %vm1631_vm6 = vcmp.eq.s32.totalorder %v5141_v16, %v1577_v19  ;;  %vm1632_vm7 = vcmp.eq.s32.totalorder %v5141_v16, %v1580_v20  ;;  %4122 = vmatmul.mubr.msk.bf16.gmra.mxu1 %vm1746_vm9, %v1476_v17  ;;  %v890_v36 = vpop.f32.mrf.mxu0 }
 0x1d5   : > { %v3671_v26 = vsel %vm1631_vm6, 1.0, %v4674_v21  ;;  %v3672_v27 = vsel %vm1632_vm7, 1.0, %v4674_v21  ;;  %4339 = vpow2.f32 %v3587_v33  ;;  %v3590_v40 = vmul.f32 -1.442695, %v5282_v34 }
 0x1d6   : > { %v1717_v29 = vpack.c.bf16 %v3672_v27, %v3671_v26  ;;  %v5293_v42 = vadd.f32 %v5257_v9, %v890_v36  ;;  %v4077_v43 = vpop.f32.mrf.mxu0 }
 0x1d7   : > { %v1337_v31 = vpop.permute.xlu0 %1336  ;;  %v1340_v32 = vpop.permute.xlu1 %1339  ;;  %4341 = vpow2.f32 %v3590_v40  ;;  %v5296_v46 = vadd.f32 %v4077_v43, %v5257_v9 }
 0x1d8   : > { %vm1391_vm8 = vcmp.eq.s32.totalorder %v5141_v16, %v1337_v31  ;;  %vm1392_vm10 = vcmp.eq.s32.totalorder %v5141_v16, %v1340_v32  ;;  %4159 = vmatprep.mubr.msk.bf16.mxu0 %vm1746_vm9, %v1717_v29  ;;  %v3588_v47 = vmul.f32 -1.442695, %v5293_v42  ;;  %v903_v48 = vpop.f32.mrf.mxu0 }
 0x1d9   : > { %v3639_v38 = vsel %vm1391_vm8, 1.0, %v4674_v21  ;;  %v3640_v39 = vsel %vm1392_vm10, 1.0, %v4674_v21  ;;  %v3593_v51 = vmul.f32 -1.442695, %v5296_v46  ;;  %v5306_v52 = vadd.f32 %v5257_v9, %v903_v48 }
 0x1da   : > { %v1477_v41 = vpack.c.bf16 %v3640_v39, %v3639_v38  ;;  %4343 = vpow2.f32 %v3588_v47  ;;  %v4078_v54 = vpop.f32.mrf.mxu0 }
 0x1db   : > { %v1583_v44 = vpop.permute.xlu0 %1582  ;;  %v1586_v45 = vpop.permute.xlu1 %1585  ;;  %4345 = vpow2.f32 %v3593_v51  ;;  %v3591_v57 = vmul.f32 -1.442695, %v5306_v52  ;;  %v5310_v58 = vadd.f32 %v4078_v54, %v5257_v9 }
 0x1dc   : > { %vm1633_vm11 = vcmp.eq.s32.totalorder %v5141_v16, %v1583_v44  ;;  %vm1634_vm12 = vcmp.eq.s32.totalorder %v5141_v16, %v1586_v45  ;;  %4125 = vmatprep.mubr.msk.bf16.mxu1 %vm1746_vm9, %v1477_v41  ;;  %v906_v59 = vpop.f32.mrf.mxu0 }
 0x1dd   : > { %v3673_v49 = vsel %vm1633_vm11, 1.0, %v4674_v21  ;;  %v3674_v50 = vsel %vm1634_vm12, 1.0, %v4674_v21  ;;  %4347 = vpow2.f32 %v3591_v57  ;;  %v3594_v62 = vmul.f32 -1.442695, %v5310_v58 }
 0x1de   : > { %v1718_v53 = vpack.c.bf16 %v3674_v50, %v3673_v49  ;;  %v5319_v0 = vadd.f32 %v5257_v9, %v906_v59  ;;  %v4081_v1 = vpop.f32.mrf.mxu0 }
 0x1df   : > { %v1343_v55 = vpop.permute.xlu0 %1342  ;;  %v1346_v56 = vpop.permute.xlu1 %1345  ;;  %4349 = vpow2.f32 %v3594_v62  ;;  %v5322_v6 = vadd.f32 %v4081_v1, %v5257_v9 }
 0x1e0   : > { %vm1393_vm13 = vcmp.eq.s32.totalorder %v5141_v16, %v1343_v55  ;;  %vm1394_vm14 = vcmp.eq.s32.totalorder %v5141_v16, %v1346_v56  ;;  %4160 = vmatmul.mubr.msk.bf16.gmra.mxu0 %vm1746_vm9, %v1718_v53  ;;  %v4338_v2 = vpop.eup %4337  ;;  %v3592_v8 = vmul.f32 -1.442695, %v5319_v0  ;;  %v919_v10 = vpop.f32.mrf.mxu0 }
 0x1e1   : > { %v3641_v60 = vsel %vm1393_vm13, 1.0, %v4674_v21  ;;  %v3642_v61 = vsel %vm1394_vm14, 1.0, %v4674_v21  ;;  %v1112_v7 = vadd.f32 1.0, %v4338_v2  ;;  %v3597_v14 = vmul.f32 -1.442695, %v5322_v6 }
 0x1e2   : > { %v1478_v63 = vpack.c.bf16 %v3642_v61, %v3641_v60  ;;  %v5332_v15 = vadd.f32 %v5257_v9, %v919_v10  ;;  %v4340_v17 = vpop.eup %4339  ;;  %v4082_v20 = vpop.f32.mrf.mxu0 }
 0x1e3   : > { %v1589_v3 = vpop.permute.xlu0 %1588  ;;  %v1592_v4 = vpop.permute.xlu1 %1591  ;;  %4351 = vrcp.f32 %v1112_v7  ;;  %v1110_v24 = vadd.f32 1.0, %v4340_v17  ;;  %v5336_v26 = vadd.f32 %v4082_v20, %v5257_v9 }
 0x1e4   : > { %vm1635_vm15 = vcmp.eq.s32.totalorder %v5141_v16, %v1589_v3  ;;  %vm1636_vm0 = vcmp.eq.s32.totalorder %v5141_v16, %v1592_v4  ;;  %4126 = vmatmul.mubr.msk.bf16.gmra.mxu1 %vm1746_vm9, %v1478_v63  ;;  %4353 = vpow2.f32 %v3592_v8  ;;  %v3595_v25 = vmul.f32 -1.442695, %v5332_v15  ;;  %v4342_v27 = vpop.eup %4341  ;;  %v922_v29 = vpop.f32.mrf.mxu0 }
 0x1e5   : > { %v3675_v11 = vsel %vm1635_vm15, 1.0, %v4674_v21  ;;  %v3676_v12 = vsel %vm1636_vm0, 1.0, %v4674_v21  ;;  %4355 = vpow2.f32 %v3597_v14  ;;  %v1113_v32 = vadd.f32 1.0, %v4342_v27 }
 0x1e6   : > { %v1719_v19 = vpack.c.bf16 %v3676_v12, %v3675_v11  ;;  %4357 = vrcp.f32 %v1110_v24  ;;  %v3598_v35 = vmul.f32 -1.442695, %v5336_v26  ;;  %v5345_v36 = vadd.f32 %v5257_v9, %v922_v29  ;;  %v4085_v37 = vpop.f32.mrf.mxu0 }
 0x1e7   : > { %v1349_v22 = vpop.permute.xlu0 %1348  ;;  %v1352_v23 = vpop.permute.xlu1 %1351  ;;  %4359 = vpow2.f32 %v3595_v25  ;;  %v5348_v41 = vadd.f32 %v4085_v37, %v5257_v9 }
 0x1e8   : > { %vm1395_vm1 = vcmp.eq.s32.totalorder %v5141_v16, %v1349_v22  ;;  %vm1396_vm2 = vcmp.eq.s32.totalorder %v5141_v16, %v1352_v23  ;;  %4163 = vmatprep.mubr.msk.bf16.mxu0 %vm1746_vm9, %v1719_v19  ;;  %v4344_v38 = vpop.eup %4343  ;;  %4361 = vrcp.f32 %v1113_v32  ;;  %v935_v45 = vpop.f32.mrf.mxu0  ;;  %v3596_v49 = vmul.f32 -1.442695, %v5345_v36 }
 0x1e9   : > { %v3643_v30 = vsel %vm1395_vm1, 1.0, %v4674_v21  ;;  %v3644_v31 = vsel %vm1396_vm2, 1.0, %v4674_v21  ;;  %v4346_v43 = vpop.eup %4345  ;;  %v1111_v44 = vadd.f32 1.0, %v4344_v38  ;;  %4363 = vpow2.f32 %v3598_v35 }
 0x1ea   : > { %v1479_v33 = vpack.c.bf16 %v3644_v31, %v3643_v30  ;;  %v4348_v50 = vpop.eup %4347  ;;  %v3601_v53 = vmul.f32 -1.442695, %v5348_v41  ;;  %v5358_v54 = vadd.f32 %v5257_v9, %v935_v45  ;;  %v4086_v55 = vpop.f32.mrf.mxu0  ;;  %v1116_v56 = vadd.f32 1.0, %v4346_v43 }
 0x1eb   : > { %v1595_v39 = vpop.permute.xlu0 %1594  ;;  %v1598_v40 = vpop.permute.xlu1 %1597  ;;  %4365 = vrcp.f32 %v1111_v44  ;;  %v1114_v60 = vadd.f32 1.0, %v4348_v50  ;;  %v5361_v61 = vadd.f32 %v4086_v55, %v5257_v9 }
 0x1ec   : > { %vm1637_vm5 = vcmp.eq.s32.totalorder %v5141_v16, %v1595_v39  ;;  %vm1638_vm6 = vcmp.eq.s32.totalorder %v5141_v16, %v1598_v40  ;;  %4129 = vmatprep.mubr.msk.bf16.mxu1 %vm1746_vm9, %v1479_v33  ;;  %v4350_v62 = vpop.eup %4349  ;;  %4367 = vpow2.f32 %v3596_v49  ;;  %v3599_v63 = vmul.f32 -1.442695, %v5358_v54  ;;  %v938_v1 = vpop.f32.mrf.mxu0 }
 0x1ed   : > { %v3677_v47 = vsel %vm1637_vm5, 1.0, %v4674_v21  ;;  %v3678_v48 = vsel %vm1638_vm6, 1.0, %v4674_v21  ;;  %4369 = vrcp.f32 %v1114_v60  ;;  %v1117_v4 = vadd.f32 1.0, %v4350_v62 }
 0x1ee   : > { %v1720_v51 = vpack.c.bf16 %v3678_v48, %v3677_v47  ;;  %4371 = vpow2.f32 %v3601_v53  ;;  %v3602_v8 = vmul.f32 -1.442695, %v5361_v61  ;;  %v5371_v10 = vadd.f32 %v5257_v9, %v938_v1  ;;  %v4089_v11 = vpop.f32.mrf.mxu0 }
 0x1ef   : > { %v1355_v57 = vpop.permute.xlu0 %1354  ;;  %v1358_v59 = vpop.permute.xlu1 %1357  ;;  %4373 = vrcp.f32 %v1116_v56  ;;  %v5374_v19 = vadd.f32 %v4089_v11, %v5257_v9 }
 0x1f0   : > { %vm1397_vm7 = vcmp.eq.s32.totalorder %v5141_v16, %v1355_v57  ;;  %vm1398_vm8 = vcmp.eq.s32.totalorder %v5141_v16, %v1358_v59  ;;  %4164 = vmatmul.mubr.msk.bf16.gmra.mxu0 %vm1746_vm9, %v1720_v51  ;;  %v4352_v12 = vpop.eup %4351  ;;  %4375 = vpow2.f32 %v3599_v63  ;;  %v951_v22 = vpop.f32.mrf.mxu0  ;;  %v3600_v32 = vmul.f32 -1.442695, %v5371_v10 }
 0x1f1   : > { %v3645_v2 = vsel %vm1397_vm7, 1.0, %v4674_v21  ;;  %v3646_v3 = vsel %vm1398_vm8, 1.0, %v4674_v21  ;;  %v4354_v20 = vpop.eup %4353  ;;  %4377 = vpow2.f32 %v3602_v8  ;;  %v3605_v39 = vmul.f32 -1.442695, %v5374_v19 }
 0x1f2   : > { %v1480_v7 = vpack.c.bf16 %v3646_v3, %v3645_v2  ;;  %v4356_v23 = vpop.eup %4355  ;;  %v1115_v27 = vadd.f32 1.0, %v4354_v20  ;;  %4379 = vrcp.f32 %v1117_v4  ;;  %v4090_v33 = vpop.f32.mrf.mxu0  ;;  %v5384_v40 = vadd.f32 %v5257_v9, %v951_v22 }
 0x1f3   : > { %v1601_v14 = vpop.permute.xlu0 %1600  ;;  %v1604_v17 = vpop.permute.xlu1 %1603  ;;  %v1120_v31 = vadd.f32 1.0, %v4356_v23  ;;  %v5387_v43 = vadd.f32 %v4090_v33, %v5257_v9  ;;  %v5393_v49 = vmul.f32 %v4352_v12, %v5267_v18 }
 0x1f4   : > { %vm1639_vm10 = vcmp.eq.s32.totalorder %v5141_v16, %v1601_v14  ;;  %vm1640_vm11 = vcmp.eq.s32.totalorder %v5141_v16, %v1604_v17  ;;  %4130 = vmatmul.mubr.msk.bf16.gmra.mxu1 %vm1746_vm9, %v1480_v7  ;;  %v4358_v29 = vpop.eup %4357  ;;  %4381 = vrcp.f32 %v1115_v27  ;;  %v954_v47 = vpop.f32.mrf.mxu0  ;;  %v3603_v56 = vmul.f32 -1.442695, %v5384_v40 }
 0x1f5   : > { %v3679_v24 = vsel %vm1639_vm10, 1.0, %v4674_v21  ;;  %v3680_v25 = vsel %vm1640_vm11, 1.0, %v4674_v21  ;;  %v4360_v35 = vpop.eup %4359  ;;  %4383 = vpow2.f32 %v3600_v32  ;;  %v5398_v53 = vmul.f32 %v4358_v29, %v5278_v28 }
 0x1f6   : > { %v1721_v30 = vpack.c.bf16 %v3680_v25, %v3679_v24  ;;  %v4362_v44 = vpop.eup %4361  ;;  %v1118_v45 = vadd.f32 1.0, %v4360_v35  ;;  %4385 = vrcp.f32 %v1120_v31  ;;  %v4093_v57 = vpop.f32.mrf.mxu0  ;;  %v3606_v18 = vmul.f32 -1.442695, %v5387_v43 }
 0x1f7   : > { %v1361_v37 = vpop.permute.xlu0 %1360  ;;  %v1364_v38 = vpop.permute.xlu1 %1363  ;;  %4387 = vpow2.f32 %v3605_v39  ;;  %v5403_v1 = vadd.f32 %v5257_v9, %v954_v47  ;;  %v5406_v2 = vmul.f32 %v4362_v44, %v5282_v34  ;;  %v5416_v24 = vadd.f32 %v4093_v57, %v5257_v9 }
 0x1f8   : > { %vm1399_vm12 = vcmp.eq.s32.totalorder %v5141_v16, %v1361_v37  ;;  %vm1400_vm13 = vcmp.eq.s32.totalorder %v5141_v16, %v1364_v38  ;;  %4167 = vmatprep.mubr.msk.bf16.mxu0 %vm1746_vm9, %v1721_v30  ;;  %v4364_v48 = vpop.eup %4363  ;;  %4389 = vrcp.f32 %v1118_v45  ;;  %v967_v28 = vpop.f32.mrf.mxu0  ;;  %vm4677_vm10 = vmmov (%p3221_p6), 0  }
 0x1f9   : > { %v3647_v50 = vsel %vm1399_vm12, 1.0, %v4674_v21  ;;  %v3648_v51 = vsel %vm1400_vm13, 1.0, %v4674_v21  ;;  %v4366_v59 = vpop.eup %4365  ;;  %v1121_v60 = vadd.f32 1.0, %v4364_v48  ;;  %4391 = vpow2.f32 %v3603_v56 }
 0x1fa   : > { %v1481_v55 = vpack.c.bf16 %v3648_v51, %v3647_v50  ;;  %v4368_v3 = vpop.eup %4367  ;;  %v1207_v4 = vmul.f32 %v4366_v59, %v5293_v42  ;;  %4393 = vpow2.f32 %v3606_v18  ;;  %v3604_v14 = vmul.f32 -1.442695, %v5403_v1  ;;  %v4094_v17 = vpop.f32.mrf.mxu0 }
 0x1fb   : > { %v1607_v62 = vpop.permute.xlu0 %1606  ;;  %v1610_v63 = vpop.permute.xlu1 %1609  ;;  %v1119_v34 = vadd.f32 1.0, %v4368_v3  ;;  %4395 = vrcp.f32 %v1121_v60  ;;  %v5419_v42 = vadd.f32 %v5257_v9, %v967_v28  ;;  %v5422_v25 = vadd.f32 %v4094_v17, %v5257_v9 }
 0x1fc   : > { %vm1641_vm14 = vcmp.eq.s32.totalorder %v5141_v16, %v1607_v62  ;;  %vm1642_vm15 = vcmp.eq.s32.totalorder %v5141_v16, %v1610_v63  ;;  %4133 = vmatprep.mubr.msk.bf16.mxu1 %vm1746_vm9, %v1481_v55  ;;  %v4370_v11 = vpop.eup %4369  ;;  %v970_v30 = vpop.f32.mrf.mxu0  ;;  %v2198_v32 = vpack.c.bf16 %v5406_v2, %v5393_v49  ;;  %v3609_v45 = vmul.f32 -1.442695, %v5416_v24 }
 0x1fd   : > { %v3681_v7 = vsel %vm1641_vm14, 1.0, %v4674_v21  ;;  %v3682_v8 = vsel %vm1642_vm15, 1.0, %v4674_v21  ;;  %v4372_v20 = vpop.eup %4371  ;;  %4397 = vrcp.f32 %v1119_v34  ;;  %v1210_v38 = vmul.f32 %v4370_v11, %v5306_v52 }
 0x1fe   : > { %v1722_v12 = vpack.c.bf16 %v3682_v8, %v3681_v7  ;;  %v4374_v27 = vpop.eup %4373  ;;  %v1124_v29 = vadd.f32 1.0, %v4372_v20  ;;  %4399 = vpow2.f32 %v3604_v14  ;;  %v3607_v50 = vmul.f32 -1.442695, %v5419_v42 }
 0x1ff   : > { %v1367_v22 = vpop.permute.xlu0 %1366  ;;  %v1370_v23 = vpop.permute.xlu1 %1369  ;;  %v2197_v49 = vpack.c.bf16 %v1207_v4, %v5398_v53  ;;  %v5438_v52 = vadd.f32 %v5257_v9, %v970_v30  ;;  %v1212_v53 = vmul.f32 %v4374_v27, %v5296_v46 }
 0x200   : > { %vm1401_vm0 = vcmp.eq.s32.totalorder %v5141_v16, %v1367_v22  ;;  %vm1402_vm1 = vcmp.eq.s32.totalorder %v5141_v16, %v1370_v23  ;;  %4168 = vmatmul.mubr.msk.bf16.gmra.mxu0 %vm1746_vm9, %v1722_v12  ;;  %v4376_v31 = vpop.eup %4375  ;;  %v4097_v16 = vpop.f32.mrf.mxu0  ;;  %4401 = vrcp.f32 %v1124_v29 }
 0x201   : > { %v3649_v33 = vsel %vm1401_vm0, 1.0, %v4674_v21  ;;  %v3650_v35 = vsel %vm1402_vm1, 1.0, %v4674_v21  ;;  %v4378_v37 = vpop.eup %4377  ;;  %v1122_v44 = vadd.f32 1.0, %v4376_v31  ;;  %v3610_v21 = vmul.f32 -1.442695, %v5422_v25  ;;  %4187 = vmatprep.mubr.bf16.mxu0 %v2197_v49 }
 0x202   : > { %v1482_v39 = vpack.c.bf16 %v3650_v35, %v3649_v33  ;;  %v4380_v47 = vpop.eup %4379  ;;  %v1125_v48 = vadd.f32 1.0, %v4378_v37  ;;  %v5441_v55 = vadd.f32 %v4097_v16, %v5257_v9  ;;  %v983_v56 = vpop.f32.mrf.mxu0  ;;  %v3608_v62 = vmul.f32 -1.442695, %v5438_v52 }
 0x203   : > { %v4382_v51 = vpop.eup %4381  ;;  %4403 = vrcp.f32 %v1122_v44  ;;  %v1213_v60 = vmul.f32 %v4380_v47, %v5310_v58  ;;  %v5448_v28 = vadd.f32 %v5257_v9, %v983_v56 }
 0x204   : > { %4134 = vmatmul.mubr.msk.bf16.gmra.mxu1 %vm1746_vm9, %v1482_v39  ;;  %v1211_v57 = vmul.f32 %v4382_v51, %v5319_v0  ;;  %4405 = vrcp.f32 %v1125_v48  ;;  %v4384_v59 = vpop.eup %4383  ;;  %v4098_v63 = vpop.f32.mrf.mxu0  ;;  %v3613_v0 = vmul.f32 -1.442695, %v5441_v55 }
 0x205   : > { %4407 = vpow2.f32 %v3609_v45  ;;  %v4386_v18 = vpop.eup %4385  ;;  %v1123_v2 = vadd.f32 1.0, %v4384_v59  ;;  %v5452_v4 = vadd.f32 %v4098_v63, %v5257_v9  ;;  %v2200_v34 = vpack.c.bf16 %v1213_v60, %v1212_v53 }
 0x206   : > { %4409 = vpow2.f32 %v3607_v50  ;;  %v4388_v3 = vpop.eup %4387  ;;  %v2199_v46 = vpack.c.bf16 %v1211_v57, %v1210_v38  ;;  %v986_v58 = vpop.f32.mrf.mxu0  ;;  %v3611_v22 = vmul.f32 -1.442695, %v5448_v28  ;;  %v1216_v38 = vmul.f32 %v4386_v18, %v5322_v6 }
 0x207   : > { %4411 = vpow2.f32 %v3610_v21  ;;  %v4390_v7 = vpop.eup %4389  ;;  %v1128_v8 = vadd.f32 1.0, %v4388_v3  ;;  %v5455_v12 = vadd.f32 %v5257_v9, %v986_v58  ;;  %v3614_v31 = vmul.f32 -1.442695, %v5452_v4 }
 0x208   : > { %4188 = vmatmul.mubr.bf16.vlgmr.msra.gmra.mxu0 %v2198_v32  ;;  %4413 = vrcp.f32 %v1123_v2  ;;  %v4392_v11 = vpop.eup %4391  ;;  %v4101_v14 = vpop.f32.mrf.mxu0  ;;  %v1214_v29 = vmul.f32 %v4390_v7, %v5332_v15 }
 0x209   : > { %4415 = vpow2.f32 %v3608_v62  ;;  %4191 = vmatprep.mubr.bf16.mxu0 %v2199_v46  ;;  %v4394_v17 = vpop.eup %4393  ;;  %v1126_v20 = vadd.f32 1.0, %v4392_v11  ;;  %v5459_v23 = vadd.f32 %v4101_v14, %v5257_v9  ;;  %v3612_v44 = vmul.f32 -1.442695, %v5455_v12 }
 0x20a   : > { %4417 = vrcp.f32 %v1128_v8  ;;  %v4396_v27 = vpop.eup %4395  ;;  %v1129_v30 = vadd.f32 1.0, %v4394_v17  ;;  %v999_v32 = vpop.f32.mrf.mxu0 }
 0x20b   : > { %4419 = vpow2.f32 %v3613_v0  ;;  %v4398_v33 = vpop.eup %4397  ;;  %v5464_v35 = vadd.f32 %v5257_v9, %v999_v32  ;;  %v3617_v16 = vmul.f32 -1.442695, %v5459_v23  ;;  %v1217_v50 = vmul.f32 %v4396_v27, %v5336_v26 }
 0x20c   : > { %4421 = vrcp.f32 %v1126_v20  ;;  %v4400_v37 = vpop.eup %4399  ;;  %v1215_v39 = vmul.f32 %v4398_v33, %v5345_v36  ;;  %v4102_v45 = vpop.f32.mrf.mxu0 }
 0x20d   : > { %4423 = vrcp.f32 %v1129_v30  ;;  %v1127_v15 = vadd.f32 1.0, %v4400_v37  ;;  %v5471_v47 = vadd.f32 %v4102_v45, %v5257_v9  ;;  %v4402_v48 = vpop.eup %4401  ;;  %v3615_v6 = vmul.f32 -1.442695, %v5464_v35 }
 0x20e   : > { %4425 = vpow2.f32 %v3611_v22  ;;  %v2201_v49 = vpack.c.bf16 %v1215_v39, %v1214_v29  ;;  %v1002_v36 = vpop.f32.mrf.mxu0  ;;  %v2202_v60 = vpack.c.bf16 %v1217_v50, %v1216_v38  ;;  %v1220_v7 = vmul.f32 %v4402_v48, %v5348_v41 }
 0x20f   : > { %4427 = vpow2.f32 %v3614_v31  ;;  %v3618_v21 = vmul.f32 -1.442695, %v5471_v47  ;;  %v5477_v56 = vadd.f32 %v5257_v9, %v1002_v36 }
 0x210   : > { %4192 = vmatmul.mubr.bf16.gmra.mxu0 %v2200_v34  ;;  %v4404_v51 = vpop.eup %4403  ;;  %4429 = vrcp.f32 %v1127_v15 }
 0x211   : > { %v4406_v57 = vpop.eup %4405  ;;  %4431 = vpow2.f32 %v3612_v44  ;;  %4195 = vmatprep.mubr.bf16.mxu0 %v2201_v49  ;;  %v1218_v63 = vmul.f32 %v4404_v51, %v5358_v54  ;;  %v3616_v2 = vmul.f32 -1.442695, %v5477_v56 }
 0x212   : > { %v4408_v59 = vpop.eup %4407  ;;  %4433 = vpow2.f32 %v3617_v16  ;;  %v1221_v8 = vmul.f32 %v4406_v57, %v5361_v61 }
 0x213   : > { %v4410_v53 = vpop.eup %4409  ;;  %v1132_v26 = vadd.f32 1.0, %v4408_v59  ;;  %4435 = vpow2.f32 %v3615_v6 }
 0x214   : > { %v4412_v62 = vpop.eup %4411  ;;  %v1130_v18 = vadd.f32 1.0, %v4410_v53  ;;  %4437 = vpow2.f32 %v3618_v21  ;;  %v2204_v27 = vpack.c.bf16 %v1221_v8, %v1220_v7 }
 0x215   : > { %v4414_v3 = vpop.eup %4413  ;;  %4439 = vrcp.f32 %v1132_v26  ;;  %v1133_v9 = vadd.f32 1.0, %v4412_v62 }
 0x216   : > { %v4416_v0 = vpop.eup %4415  ;;  %v1219_v46 = vmul.f32 %v4414_v3, %v5371_v10  ;;  %4441 = vrcp.f32 %v1130_v18 }
 0x217   : > { %v4418_v58 = vpop.eup %4417  ;;  %4443 = vrcp.f32 %v1133_v9  ;;  %v1131_v11 = vadd.f32 1.0, %v4416_v0 }
 0x218   : > { %4196 = vmatmul.mubr.bf16.gmra.mxu0 %v2202_v60  ;;  %v4420_v54 = vpop.eup %4419  ;;  %4445 = vpow2.f32 %v3616_v2  ;;  %v2203_v34 = vpack.c.bf16 %v1219_v46, %v1218_v63  ;;  %v1224_v37 = vmul.f32 %v4418_v58, %v5374_v19 }
 0x219   : > { %v4422_v14 = vpop.eup %4421  ;;  %4447 = vrcp.f32 %v1131_v11  ;;  %v1136_v17 = vadd.f32 1.0, %v4420_v54 }
 0x21a   : > { %v4424_v20 = vpop.eup %4423  ;;  %4199 = vmatprep.mubr.bf16.mxu0 %v2203_v34  ;;  %v1222_v29 = vmul.f32 %v4422_v14, %v5384_v40 }
 0x21b   : > { %v4426_v22 = vpop.eup %4425  ;;  %4449 = vrcp.f32 %v1136_v17  ;;  %v1225_v38 = vmul.f32 %v4424_v20, %v5387_v43 }
 0x21c   : > { %v4428_v10 = vpop.eup %4427  ;;  %v1134_v30 = vadd.f32 1.0, %v4426_v22 }
 0x21d   : > { %v4430_v41 = vpop.eup %4429  ;;  %v1137_v61 = vadd.f32 1.0, %v4428_v10 }
 0x21e   : > { %v4432_v31 = vpop.eup %4431  ;;  %v1223_v32 = vmul.f32 %v4430_v41, %v5403_v1  ;;  %4451 = vrcp.f32 %v1134_v30  ;;  %v2206_v1 = vpack.c.bf16 %v1225_v38, %v1224_v37 }
 0x21f   : > { %v4434_v33 = vpop.eup %4433  ;;  %4453 = vrcp.f32 %v1137_v61  ;;  %v1135_v39 = vadd.f32 1.0, %v4432_v31 }
 0x220   : > { %4200 = vmatmul.mubr.bf16.gmra.mxu0 %v2204_v27  ;;  %v4436_v44 = vpop.eup %4435  ;;  %v2205_v45 = vpack.c.bf16 %v1223_v32, %v1222_v29  ;;  %v1140_v48 = vadd.f32 1.0, %v4434_v33 }
 0x221   : > { %v4438_v15 = vpop.eup %4437  ;;  %4455 = vrcp.f32 %v1135_v39  ;;  %v1138_v40 = vadd.f32 1.0, %v4436_v44 }
 0x222   : > { %v4440_v16 = vpop.eup %4439  ;;  %4203 = vmatprep.mubr.bf16.mxu0 %v2205_v45  ;;  %v1141_v6 = vadd.f32 1.0, %v4438_v15 }
 0x223   : > { %v4442_v50 = vpop.eup %4441  ;;  %4457 = vrcp.f32 %v1138_v40  ;;  %v1228_v21 = vmul.f32 %v4440_v16, %v5416_v24 }
 0x224   : > { %v4444_v49 = vpop.eup %4443  ;;  %v1226_v19 = vmul.f32 %v4442_v50, %v5419_v42  ;;  %4459 = vrcp.f32 %v1140_v48 }
 0x225   : > { %v4446_v36 = vpop.eup %4445  ;;  %v1229_v57 = vmul.f32 %v4444_v49, %v5422_v25  ;;  %4461 = vrcp.f32 %v1141_v6 }
 0x226   : > { %v4448_v43 = vpop.eup %4447  ;;  %v1139_v51 = vadd.f32 1.0, %v4446_v36 }
 0x227   : > { %v1227_v59 = vmul.f32 %v4448_v43, %v5438_v52  ;;  %v2208_v62 = vpack.c.bf16 %v1229_v57, %v1228_v21 }
 0x228   : > { %4204 = vmatmul.mubr.bf16.gmra.mxu0 %v2206_v1  ;;  %4463 = vrcp.f32 %v1139_v51  ;;  %v4450_v26 = vpop.eup %4449 }
 0x229   : > { %v2207_v53 = vpack.c.bf16 %v1227_v59, %v1226_v19  ;;  %v1232_v2 = vmul.f32 %v4450_v26, %v5441_v55 }
 0x22b   : > { %v4452_v60 = vpop.eup %4451  ;;  %4207 = vmatprep.mubr.bf16.mxu0 %v2207_v53 }
 0x22c   : > { %v4454_v63 = vpop.eup %4453  ;;  %v1230_v42 = vmul.f32 %v4452_v60, %v5448_v28 }
 0x22d   : > { %v1233_v24 = vmul.f32 %v4454_v63, %v5452_v4 }
 0x22e   : > { %v4456_v18 = vpop.eup %4455 }
 0x22f   : > { %v1231_v25 = vmul.f32 %v4456_v18, %v5455_v12  ;;  %v2210_v0 = vpack.c.bf16 %v1233_v24, %v1232_v2 }
 0x230   : > { %4208 = vmatmul.mubr.bf16.gmra.mxu0 %v2208_v62  ;;  %v4458_v52 = vpop.eup %4457 }
 0x231   : > { %v2209_v3 = vpack.c.bf16 %v1231_v25, %v1230_v42  ;;  %v4460_v9 = vpop.eup %4459  ;;  %v1234_v58 = vmul.f32 %v4458_v52, %v5464_v35 }
 0x232   : > { %v4462_v46 = vpop.eup %4461  ;;  %v1236_v28 = vmul.f32 %v4460_v9, %v5459_v23 }
 0x233   : > { %4211 = vmatprep.mubr.bf16.mxu0 %v2209_v3  ;;  %v1237_v55 = vmul.f32 %v4462_v46, %v5471_v47 }
 0x235   : > { %v4464_v7 = vpop.eup %4463  ;;  %v2212_v12 = vpack.c.bf16 %v1237_v55, %v1236_v28 }
 0x236   : > { %v1235_v8 = vmul.f32 %v4464_v7, %v5477_v56 }
 0x238   : > { %4212 = vmatmul.mubr.bf16.gmra.mxu0 %v2210_v0  ;;  %v2211_v4 = vpack.c.bf16 %v1235_v8, %v1234_v58 }
 0x23a   : > { %4215 = vmatprep.mubr.bf16.mxu0 %v2211_v4 }
 0x240   : > { %4216 = vmatmul.mubr.bf16.gmra.mxu0 %v2212_v12 }
 0x250   : > { %v4141_v11 = vpop.f32.mrf.mxu0 }
 0x252   : > { %v2038_v54 = vpop.f32.mrf.mxu0 }
 0x254   : > { %v4107_v34 = vpop.f32.mrf.mxu1  ;;  %v4142_v14 = vpop.f32.mrf.mxu0 }
 0x255   : > { %v2182_v10 = vpack.c.bf16 %v4142_v14, %v4141_v11 }
 0x256   : > { %v1829_v17 = vpop.f32.mrf.mxu1  ;;  %v2041_v20 = vpop.f32.mrf.mxu0 }
 0x257   : > { %v2181_v22 = vpack.c.bf16 %v2041_v20, %v2038_v54 }
 0x258   : > { %v4108_v35 = vpop.f32.mrf.mxu1 }
 0x259   : > { %2444 = vmatprep.mubr.bf16.mxu1 %v2181_v22  ;;  %v2166_v29 = vpack.c.bf16 %v4108_v35, %v4107_v34 }
 0x25a   : > { %v1832_v27 = vpop.f32.mrf.mxu1 }
 0x25b   : > { %v2165_v56 = vpack.c.bf16 %v1832_v27, %v1829_v17 }
 0x25d   : > { %2445 = vmatmul.mubr.bf16.vlgmr.msra.gmra.mxu1 %v2165_v56 }
 0x25e   : > { %2452 = vmatprep.mubr.bf16.mxu1 %v2182_v10 }
 0x260   : > { %v4145_v23 = vpop.f32.mrf.mxu0 }
 0x262   : > { %v2054_v47 = vpop.f32.mrf.mxu0 }
 0x264   : > { %v4111_v30 = vpop.f32.mrf.mxu1  ;;  %v4146_v41 = vpop.f32.mrf.mxu0 }
 0x265   : > { %2453 = vmatmul.mubr.bf16.gmra.mxu1 %v2166_v29  ;;  %v2184_v39 = vpack.c.bf16 %v4146_v41, %v4145_v23 }
 0x266   : > { %v1845_v61 = vpop.f32.mrf.mxu1  ;;  %v2057_v31 = vpop.f32.mrf.mxu0 }
 0x267   : > { %v2183_v32 = vpack.c.bf16 %v2057_v31, %v2054_v47 }
 0x268   : > { %v4112_v33 = vpop.f32.mrf.mxu1 }
 0x269   : > { %2460 = vmatprep.mubr.bf16.mxu1 %v2183_v32  ;;  %v2168_v15 = vpack.c.bf16 %v4112_v33, %v4111_v30 }
 0x26a   : > { %v1848_v37 = vpop.f32.mrf.mxu1 }
 0x26b   : > { %v2167_v38 = vpack.c.bf16 %v1848_v37, %v1845_v61 }
 0x26d   : > { %2461 = vmatmul.mubr.bf16.gmra.mxu1 %v2167_v38 }
 0x26e   : > { %2468 = vmatprep.mubr.bf16.mxu1 %v2184_v39 }
 0x270   : > { %v4149_v44 = vpop.f32.mrf.mxu0 }
 0x272   : > { %v2070_v45 = vpop.f32.mrf.mxu0 }
 0x274   : > { %v4115_v40 = vpop.f32.mrf.mxu1  ;;  %v4150_v16 = vpop.f32.mrf.mxu0 }
 0x275   : > { %2469 = vmatmul.mubr.bf16.gmra.mxu1 %v2168_v15  ;;  %v2186_v19 = vpack.c.bf16 %v4150_v16, %v4149_v44 }
 0x276   : > { %v1861_v48 = vpop.f32.mrf.mxu1  ;;  %v2073_v50 = vpop.f32.mrf.mxu0 }
 0x277   : > { %v2185_v6 = vpack.c.bf16 %v2073_v50, %v2070_v45 }
 0x278   : > { %v4116_v1 = vpop.f32.mrf.mxu1 }
 0x279   : > { %2476 = vmatprep.mubr.bf16.mxu1 %v2185_v6  ;;  %v2170_v21 = vpack.c.bf16 %v4116_v1, %v4115_v40 }
 0x27a   : > { %v1864_v49 = vpop.f32.mrf.mxu1 }
 0x27b   : > { %v2169_v36 = vpack.c.bf16 %v1864_v49, %v1861_v48 }
 0x27d   : > { %2477 = vmatmul.mubr.bf16.gmra.mxu1 %v2169_v36 }
 0x27e   : > { %2484 = vmatprep.mubr.bf16.mxu1 %v2186_v19 }
 0x280   : > { %v4153_v43 = vpop.f32.mrf.mxu0 }
 0x282   : > { %v2086_v51 = vpop.f32.mrf.mxu0 }
 0x284   : > { %v4119_v57 = vpop.f32.mrf.mxu1  ;;  %v4154_v59 = vpop.f32.mrf.mxu0 }
 0x285   : > { %2485 = vmatmul.mubr.bf16.gmra.mxu1 %v2170_v21  ;;  %v2188_v18 = vpack.c.bf16 %v4154_v59, %v4153_v43  ;;  %v5505_v21 = vld [vmem:[%s644_s30] ss:$0 sm:$0xff] }
 0x286   : > { %v1877_v53 = vpop.f32.mrf.mxu1  ;;  %v2089_v26 = vpop.f32.mrf.mxu0 }
 0x287   : > { %v2187_v60 = vpack.c.bf16 %v2089_v26, %v2086_v51 }
 0x288   : > { %v4120_v62 = vpop.f32.mrf.mxu1 }
 0x289   : > { %2492 = vmatprep.mubr.bf16.mxu1 %v2187_v60  ;;  %v2172_v25 = vpack.c.bf16 %v4120_v62, %v4119_v57 }
 0x28a   : > { %v1880_v63 = vpop.f32.mrf.mxu1 }
 0x28b   : > { %v2171_v42 = vpack.c.bf16 %v1880_v63, %v1877_v53 }
 0x28d   : > { %2493 = vmatmul.mubr.bf16.gmra.mxu1 %v2171_v42 }
 0x28e   : > { %2500 = vmatprep.mubr.bf16.mxu1 %v2188_v18 }
 0x290   : > { %v4157_v2 = vpop.f32.mrf.mxu0 }
 0x292   : > { %v2102_v24 = vpop.f32.mrf.mxu0 }
 0x294   : > { %v4123_v52 = vpop.f32.mrf.mxu1  ;;  %v4158_v3 = vpop.f32.mrf.mxu0 }
 0x295   : > { %2501 = vmatmul.mubr.bf16.gmra.mxu1 %v2172_v25  ;;  %v2190_v28 = vpack.c.bf16 %v4158_v3, %v4157_v2 }
 0x296   : > { %v1893_v9 = vpop.f32.mrf.mxu1  ;;  %v2105_v0 = vpop.f32.mrf.mxu0 }
 0x297   : > { %v2189_v46 = vpack.c.bf16 %v2105_v0, %v2102_v24 }
 0x298   : > { %v4124_v58 = vpop.f32.mrf.mxu1 }
 0x299   : > { %2508 = vmatprep.mubr.bf16.mxu1 %v2189_v46  ;;  %v2174_v12 = vpack.c.bf16 %v4124_v58, %v4123_v52 }
 0x29a   : > { %v1896_v7 = vpop.f32.mrf.mxu1 }
 0x29b   : > { %v2173_v8 = vpack.c.bf16 %v1896_v7, %v1893_v9 }
 0x29d   : > { %2509 = vmatmul.mubr.bf16.gmra.mxu1 %v2173_v8 }
 0x29e   : > { %2516 = vmatprep.mubr.bf16.mxu1 %v2190_v28 }
 0x2a0   : > { %v4161_v55 = vpop.f32.mrf.mxu0 }
 0x2a2   : > { %v2118_v4 = vpop.f32.mrf.mxu0 }
 0x2a4   : > { %v4127_v11 = vpop.f32.mrf.mxu1  ;;  %v4162_v54 = vpop.f32.mrf.mxu0 }
 0x2a5   : > { %2517 = vmatmul.mubr.bf16.gmra.mxu1 %v2174_v12  ;;  %v2192_v27 = vpack.c.bf16 %v4162_v54, %v4161_v55 }
 0x2a6   : > { %v1909_v34 = vpop.f32.mrf.mxu1  ;;  %v2121_v14 = vpop.f32.mrf.mxu0 }
 0x2a7   : > { %v2191_v17 = vpack.c.bf16 %v2121_v14, %v2118_v4 }
 0x2a8   : > { %v4128_v20 = vpop.f32.mrf.mxu1 }
 0x2a9   : > { %2524 = vmatprep.mubr.bf16.mxu1 %v2191_v17  ;;  %v2176_v23 = vpack.c.bf16 %v4128_v20, %v4127_v11 }
 0x2aa   : > { %v1912_v22 = vpop.f32.mrf.mxu1 }
 0x2ab   : > { %v2175_v35 = vpack.c.bf16 %v1912_v22, %v1909_v34 }
 0x2ad   : > { %2525 = vmatmul.mubr.bf16.gmra.mxu1 %v2175_v35 }
 0x2ae   : > { %2532 = vmatprep.mubr.bf16.mxu1 %v2192_v27 }
 0x2b0   : > { %v4165_v56 = vpop.f32.mrf.mxu0 }
 0x2b2   : > { %v2134_v10 = vpop.f32.mrf.mxu0 }
 0x2b4   : > { %v4131_v47 = vpop.f32.mrf.mxu1  ;;  %v4166_v29 = vpop.f32.mrf.mxu0 }
 0x2b5   : > { %2533 = vmatmul.mubr.bf16.gmra.mxu1 %v2176_v23  ;;  %v2194_v37 = vpack.c.bf16 %v4166_v29, %v4165_v56 }
 0x2b6   : > { %v1925_v30 = vpop.f32.mrf.mxu1  ;;  %v2137_v41 = vpop.f32.mrf.mxu0 }
 0x2b7   : > { %v2193_v61 = vpack.c.bf16 %v2137_v41, %v2134_v10 }
 0x2b8   : > { %v4132_v31 = vpop.f32.mrf.mxu1 }
 0x2b9   : > { %2540 = vmatprep.mubr.bf16.mxu1 %v2193_v61  ;;  %v2178_v44 = vpack.c.bf16 %v4132_v31, %v4131_v47 }
 0x2ba   : > { %v1928_v32 = vpop.f32.mrf.mxu1 }
 0x2bb   : > { %v2177_v33 = vpack.c.bf16 %v1928_v32, %v1925_v30 }
 0x2bd   : > { %2541 = vmatmul.mubr.bf16.gmra.mxu1 %v2177_v33 }
 0x2be   : > { %2548 = vmatprep.mubr.bf16.mxu1 %v2194_v37 }
 0x2c0   : > { %v4169_v38 = vpop.f32.mrf.mxu0 }
 0x2c2   : > { %v2150_v39 = vpop.f32.mrf.mxu0 }
 0x2c4   : > { %v4135_v45 = vpop.f32.mrf.mxu1  ;;  %v4170_v15 = vpop.f32.mrf.mxu0 }
 0x2c5   : > { %2549 = vmatmul.mubr.bf16.gmra.mxu1 %v2178_v44  ;;  %v2196_v49 = vpack.c.bf16 %v4170_v15, %v4169_v38 }
 0x2c6   : > { %v1941_v40 = vpop.f32.mrf.mxu1  ;;  %v2153_v16 = vpop.f32.mrf.mxu0 }
 0x2c7   : > { %v2195_v48 = vpack.c.bf16 %v2153_v16, %v2150_v39 }
 0x2c8   : > { %v4136_v50 = vpop.f32.mrf.mxu1  ;;  %v4189_v19 = vpop.f32.mrf.mxu0 }
 0x2c9   : > { %2556 = vmatprep.mubr.bf16.mxu1 %v2195_v48  ;;  %v2180_v36 = vpack.c.bf16 %v4136_v50, %v4135_v45 }
 0x2ca   : > { %v1944_v6 = vpop.f32.mrf.mxu1  ;;  %v2607_v51 = vpop.f32.mrf.mxu0 }
 0x2cb   : > { %v2179_v1 = vpack.c.bf16 %v1944_v6, %v1941_v40 }
 0x2cc   : > { %v4190_v60 = vpop.f32.mrf.mxu0 }
 0x2cd   : > { %2557 = vmatmul.mubr.bf16.gmra.mxu1 %v2179_v1 }
 0x2ce   : > { %2564 = vmatprep.mubr.bf16.mxu1 %v2196_v49  ;;  %v2610_v25 = vpop.f32.mrf.mxu0 }
 0x2d0   : > { %v4193_v7 = vpop.f32.mrf.mxu0 }
 0x2d2   : > { %v2623_v54 = vpop.f32.mrf.mxu0 }
 0x2d4   : > { %v4194_v27 = vpop.f32.mrf.mxu0 }
 0x2d5   : > { %2565 = vmatmul.mubr.bf16.gmra.mxu1 %v2180_v36 }
 0x2d6   : > { %v2626_v31 = vpop.f32.mrf.mxu0 }
 0x2d8   : > { %v4197_v40 = vpop.f32.mrf.mxu0 }
 0x31d   : > { %v3888_v43 = vpop.f32.mrf.mxu1 }
 0x31f   : > { %v3889_v57 = vpop.f32.mrf.mxu1 }
 0x320   : > { %v3890_v59 = vadd.f32 %v3889_v57, %v3888_v43  ;;  %v2639_v43 = vpop.f32.mrf.mxu0 }
 0x321   : > { %v3891_v53 = vpop.f32.mrf.mxu1 }
 0x322   : > { %v2447_v26 = vadd.f32 %v3890_v59, %v5505_v21 }
 0x323   : > { %v3892_v62 = vpop.f32.mrf.mxu1 }
 0x324   : > { %v5508_v63 = vadd.f32 %v2607_v51, %v2447_v26  ;;  %v3893_v42 = vadd.f32 %v3892_v62, %v3891_v53 }
 0x325   : > { %v3894_v18 = vpop.f32.mrf.mxu1 }
 0x326   : > { %v3744_v2 = vmul.f32 -1.442695, %v5508_v63  ;;  %v2450_v24 = vadd.f32 %v3893_v42, %v5505_v21 }
 0x327   : > { %v3895_v52 = vpop.f32.mrf.mxu1 }
 0x328   : > { %4465 = vpow2.f32 %v3744_v2  ;;  %v5512_v3 = vadd.f32 %v2610_v25, %v2450_v24  ;;  %v3896_v9 = vadd.f32 %v3895_v52, %v3894_v18  ;;  %v4198_v18 = vpop.f32.mrf.mxu0 }
 0x329   : > { %v3897_v0 = vpop.f32.mrf.mxu1 }
 0x32a   : > { %v3745_v46 = vmul.f32 -1.442695, %v5512_v3  ;;  %v2455_v58 = vadd.f32 %v3896_v9, %v5505_v21 }
 0x32b   : > { %v3898_v8 = vpop.f32.mrf.mxu1 }
 0x32c   : > { %4467 = vpow2.f32 %v3745_v46  ;;  %v5516_v28 = vadd.f32 %v4189_v19, %v2455_v58  ;;  %v3899_v55 = vadd.f32 %v3898_v8, %v3897_v0 }
 0x32d   : > { %v3900_v4 = vpop.f32.mrf.mxu1 }
 0x32e   : > { %v3746_v12 = vmul.f32 -1.442695, %v5516_v28  ;;  %v2458_v11 = vadd.f32 %v3899_v55, %v5505_v21 }
 0x32f   : > { %v3901_v34 = vpop.f32.mrf.mxu1 }
 0x330   : > { %4469 = vpow2.f32 %v3746_v12  ;;  %v5520_v14 = vadd.f32 %v4190_v60, %v2458_v11  ;;  %v3902_v17 = vadd.f32 %v3901_v34, %v3900_v4 }
 0x331   : > { %v3903_v20 = vpop.f32.mrf.mxu1 }
 0x332   : > { %v3747_v22 = vmul.f32 -1.442695, %v5520_v14  ;;  %v2463_v35 = vadd.f32 %v3902_v17, %v5505_v21 }
 0x333   : > { %v3904_v56 = vpop.f32.mrf.mxu1 }
 0x334   : > { %4471 = vpow2.f32 %v3747_v22  ;;  %v5524_v10 = vadd.f32 %v2623_v54, %v2463_v35  ;;  %v3905_v23 = vadd.f32 %v3904_v56, %v3903_v20 }
 0x335   : > { %v4466_v47 = vpop.eup %4465  ;;  %v3906_v29 = vpop.f32.mrf.mxu1 }
 0x336   : > { %v2830_v30 = vadd.f32 1.0, %v4466_v47  ;;  %v3748_v41 = vmul.f32 -1.442695, %v5524_v10  ;;  %v2466_v61 = vadd.f32 %v3905_v23, %v5505_v21 }
 0x337   : > { %v3907_v32 = vpop.f32.mrf.mxu1 }
 0x338   : > { %v5528_v33 = vadd.f32 %v2626_v31, %v2466_v61  ;;  %v3908_v37 = vadd.f32 %v3907_v32, %v3906_v29  ;;  %4473 = vpow2.f32 %v3748_v41 }
 0x339   : > { %v4468_v38 = vpop.eup %4467  ;;  %v3909_v39 = vpop.f32.mrf.mxu1  ;;  %4475 = vrcp.f32 %v2830_v30 }
 0x33a   : > { %v2831_v44 = vadd.f32 1.0, %v4468_v38  ;;  %v3749_v45 = vmul.f32 -1.442695, %v5528_v33  ;;  %v2471_v15 = vadd.f32 %v3908_v37, %v5505_v21 }
 0x33b   : > { %v3910_v16 = vpop.f32.mrf.mxu1 }
 0x33c   : > { %4477 = vrcp.f32 %v2831_v44  ;;  %v5532_v48 = vadd.f32 %v4193_v7, %v2471_v15  ;;  %v3911_v50 = vadd.f32 %v3910_v16, %v3909_v39  ;;  %v2642_v7 = vpop.f32.mrf.mxu0 }
 0x33d   : > { %v4470_v6 = vpop.eup %4469  ;;  %4479 = vpow2.f32 %v3749_v45  ;;  %v3912_v1 = vpop.f32.mrf.mxu1 }
 0x33e   : > { %v2832_v49 = vadd.f32 1.0, %v4470_v6  ;;  %v3750_v36 = vmul.f32 -1.442695, %v5532_v48  ;;  %v2474_v19 = vadd.f32 %v3911_v50, %v5505_v21 }
 0x33f   : > { %v3913_v51 = vpop.f32.mrf.mxu1 }
 0x340   : > { %v5536_v57 = vadd.f32 %v4194_v27, %v2474_v19  ;;  %v3914_v59 = vadd.f32 %v3913_v51, %v3912_v1  ;;  %4481 = vpow2.f32 %v3750_v36  ;;  %v4201_v27 = vpop.f32.mrf.mxu0 }
 0x341   : > { %v4472_v53 = vpop.eup %4471  ;;  %v3915_v26 = vpop.f32.mrf.mxu1  ;;  %4483 = vrcp.f32 %v2832_v49 }
 0x342   : > { %v2833_v60 = vadd.f32 1.0, %v4472_v53  ;;  %v3751_v62 = vmul.f32 -1.442695, %v5536_v57  ;;  %v2479_v42 = vadd.f32 %v3914_v59, %v5505_v21  ;;  %v2655_v32 = vpop.f32.mrf.mxu0 }
 0x343   : > { %v3916_v2 = vpop.f32.mrf.mxu1 }
 0x344   : > { %4485 = vrcp.f32 %v2833_v60  ;;  %v5540_v24 = vadd.f32 %v2639_v43, %v2479_v42  ;;  %v3917_v25 = vadd.f32 %v3916_v2, %v3915_v26  ;;  %v4202_v49 = vpop.f32.mrf.mxu0 }
 0x345   : > { %4487 = vpow2.f32 %v3751_v62  ;;  %v3918_v52 = vpop.f32.mrf.mxu1  ;;  %v4474_v9 = vpop.eup %4473 }
 0x346   : > { %v3752_v0 = vmul.f32 -1.442695, %v5540_v24  ;;  %v2482_v46 = vadd.f32 %v3917_v25, %v5505_v21  ;;  %v4476_v58 = vpop.eup %4475  ;;  %v2834_v8 = vadd.f32 1.0, %v4474_v9  ;;  %v2658_v62 = vpop.f32.mrf.mxu0 }
 0x347   : > { %v3919_v55 = vpop.f32.mrf.mxu1  ;;  %v5547_v17 = vmul.f32 %v4476_v58, %v5508_v63 }
 0x348   : > { %4489 = vpow2.f32 %v3752_v0  ;;  %v5544_v4 = vadd.f32 %v2642_v7, %v2482_v46  ;;  %v3920_v12 = vadd.f32 %v3919_v55, %v3918_v52 }
 0x349   : > { %v4478_v11 = vpop.eup %4477  ;;  %v3921_v54 = vpop.f32.mrf.mxu1  ;;  %4491 = vrcp.f32 %v2834_v8 }
 0x34a   : > { %v4480_v34 = vpop.eup %4479  ;;  %v5550_v20 = vmul.f32 %v4478_v11, %v5512_v3  ;;  %v3753_v22 = vmul.f32 -1.442695, %v5544_v4  ;;  %v2487_v35 = vadd.f32 %v3920_v12, %v5505_v21  ;;  %v5580_v8 = vpop.f32.mrf.mxu0 }
 0x34b   : > { %v2835_v56 = vadd.f32 1.0, %v4480_v34  ;;  %v3922_v23 = vpop.f32.mrf.mxu1 }
 0x34c   : > { %4493 = vpow2.f32 %v3753_v22  ;;  %v5554_v47 = vadd.f32 %v4197_v40, %v2487_v35  ;;  %v3923_v29 = vadd.f32 %v3922_v23, %v3921_v54 }
 0x34d   : > { %4495 = vrcp.f32 %v2835_v56  ;;  %v3924_v63 = vpop.f32.mrf.mxu1  ;;  %v4482_v41 = vpop.eup %4481 }
 0x34e   : > { %v3754_v3 = vmul.f32 -1.442695, %v5554_v47  ;;  %v2490_v61 = vadd.f32 %v3923_v29, %v5505_v21  ;;  %v4484_v31 = vpop.eup %4483  ;;  %v2836_v37 = vadd.f32 1.0, %v4482_v41 }
 0x34f   : > { %v3925_v38 = vpop.f32.mrf.mxu1  ;;  %v5563_v16 = vmul.f32 %v4484_v31, %v5516_v28 }
 0x350   : > { %4497 = vpow2.f32 %v3754_v3  ;;  %v5560_v39 = vadd.f32 %v4198_v18, %v2490_v61  ;;  %v3926_v44 = vadd.f32 %v3925_v38, %v3924_v63  ;;  %v1241_v63 = vshrl.u32 %v1238_v13, 7  ;;  %v1723_v38 = vld [vmem:[%s5911_s4] sm:$0x3] }
 0x351   : > { %v4486_v45 = vpop.eup %4485  ;;  %v3927_v15 = vpop.f32.mrf.mxu1  ;;  %4499 = vrcp.f32 %v2836_v37 }
 0x352   : > { %v4488_v40 = vpop.eup %4487  ;;  %v5566_v50 = vmul.f32 %v4486_v45, %v5520_v14  ;;  %v3755_v6 = vmul.f32 -1.442695, %v5560_v39  ;;  %v2495_v1 = vadd.f32 %v3926_v44, %v5505_v21  ;;  %v1730_v31 = vsub.s32 1, %v1241_v63 }
 0x353   : > { %v2837_v36 = vadd.f32 1.0, %v4488_v40  ;;  %v3928_v19 = vpop.f32.mrf.mxu1  ;;  %v1726_v44 = vsub.s32 0, %v1241_v63 }
 0x354   : > { %4501 = vpow2.f32 %v3755_v6  ;;  %v5570_v43 = vadd.f32 %v2655_v32, %v2495_v1  ;;  %v3929_v51 = vadd.f32 %v3928_v19, %v3927_v15  ;;  %v1242_v6 = vadd.s32 8, %v1241_v63 }
 0x355   : > { %v4490_v28 = vpop.eup %4489  ;;  %4503 = vrcp.f32 %v2837_v36  ;;  %v3930_v53 = vpop.f32.mrf.mxu1 }
 0x356   : > { %v2838_v14 = vadd.f32 1.0, %v4490_v28  ;;  %v3756_v26 = vmul.f32 -1.442695, %v5570_v43  ;;  %v2498_v60 = vadd.f32 %v3929_v51, %v5505_v21  ;;  %v4492_v18 = vpop.eup %4491  ;;  %v1727_v51 = vrot.slane %v1723_v38, %v1726_v44 }
 0x357   : > { %v3931_v42 = vpop.f32.mrf.mxu1  ;;  %v5583_v55 = vmul.f32 %v4492_v18, %v5524_v10  ;;  %v1731_v28 = vrot.slane %v1723_v38, %v1730_v31 }
 0x358   : > { %v5576_v2 = vadd.f32 %v2658_v62, %v2498_v60  ;;  %v3932_v25 = vadd.f32 %v3931_v42, %v3930_v53  ;;  %4505 = vpow2.f32 %v3756_v26  ;;  %vm1734_vm2 = vcmp.eq.s32.totalorder %v1242_v6, %v1727_v51 }
 0x359   : > { %v4494_v52 = vpop.eup %4493  ;;  %v3933_v9 = vpop.f32.mrf.mxu1  ;;  %4507 = vrcp.f32 %v2838_v14  ;;  %vm1733_vm9 = vcmp.eq.s32.totalorder %v1241_v63, %v1731_v28  ;;  %vm1735_vm5 = vcmp.eq.s32.totalorder %v1242_v6, %v1731_v28  ;;  %vm1732_vm7 = vcmp.eq.s32.totalorder %v1241_v63, %v1727_v51  ;;  %v4327_v51 = vld [vmem:[%s4810_s23 + $0x60] sm:$0xff]  }
 0x35a   : > { %v4496_v0 = vpop.eup %4495  ;;  %v2839_v46 = vadd.f32 1.0, %v4494_v52  ;;  %v3757_v58 = vmul.f32 -1.442695, %v5576_v2  ;;  %v2503_v7 = vadd.f32 %v3932_v25, %v5505_v21  ;;  %vm3776_vm6 = vmpackc.low %vm1735_vm5, %vm1733_vm9 }
 0x35b   : > { %v5586_v12 = vmul.f32 %v4496_v0, %v5528_v33  ;;  %v3934_v11 = vpop.f32.mrf.mxu1  ;;  %v2671_v33 = vpop.f32.mrf.mxu0  ;;  %v4322_v0 = vld [vmem:[%s4810_s23 + $0x38] sm:$0xff]   ;;  %vm5622_vm8 = vmpackc.low %vm1734_vm2, %vm1732_vm7 }
 0x35c   : > { %4509 = vrcp.f32 %v2839_v46  ;;  %v5588_v54 = vadd.f32 %v4201_v27, %v2503_v7  ;;  %v3935_v34 = vadd.f32 %v3934_v11, %v3933_v9  ;;  %v4321_v9 = vld [vmem:[%s4810_s23 + $0x78] sm:$0xff]   ;;  %v5928_v7 = vmov 1.0|1.0  }
 0x35d   : > { %v4498_v22 = vpop.eup %4497  ;;  %4511 = vpow2.f32 %v3757_v58  ;;  %v3936_v35 = vpop.f32.mrf.mxu1  ;;  %3777 = vmatprep.mubr.msk.bf16.mxu0 %vm3776_vm6, %v5928_v7  ;;  %v5940_v11 = vmov 0  ;;  %4030 = vmatprep.subr.bf16.mxu1 %v4321_v9  ;;  %v4329_v9 = vld [vmem:[%s4810_s23 + $0x58] sm:$0xff]  }
 0x35e   : > { %v2840_v23 = vadd.f32 1.0, %v4498_v22  ;;  %v3758_v29 = vmul.f32 -1.442695, %v5588_v54  ;;  %v2506_v10 = vadd.f32 %v3935_v34, %v5505_v21  ;;  %v4500_v3 = vpop.eup %4499  ;;  %v5602_v1 = vpop.f32.mrf.mxu0  ;;  %v5941_v11 = vsel %vm5622_vm8, 4294967295, %v5940_v11  ;;  %v4323_v34 = vld [vmem:[%s4810_s23 + $0x70] sm:$0xff]   ;;  %4031 = vmatpush3.bf16.msra.mxu1 %v4322_v0 }
 0x35f   : > { %v3937_v41 = vpop.f32.mrf.mxu1  ;;  %5942 = vst [vmem:[#allocation11_spill] sm:$0xff] %v5941_v11  ;;  %4032 = vmatprep.subr.bf16.mxu1 %v4323_v34  ;;  %v4330_v34 = vld [vmem:[%s4810_s23 + $0x18] sm:$0xff]  }
 0x360   : > { %4513 = vrcp.f32 %v2840_v23  ;;  %v5595_v27 = vadd.f32 %v4202_v49, %v2506_v10  ;;  %v3938_v61 = vadd.f32 %v3937_v41, %v3936_v35  ;;  %v5605_v49 = vmul.f32 %v4500_v3, %v5532_v48  ;;  %v2674_v18 = vpop.f32.mrf.mxu0  ;;  %v4324_v41 = vld [vmem:[%s4810_s23 + $0x30] sm:$0xff]  }
 0x361   : > { %v4502_v32 = vpop.eup %4501  ;;  %4515 = vpow2.f32 %v3758_v29  ;;  %v3939_v37 = vpop.f32.mrf.mxu1 }
 0x362   : > { %v4504_v45 = vpop.eup %4503  ;;  %v2841_v15 = vadd.f32 1.0, %v4502_v32  ;;  %v3759_v13 = vmul.f32 -1.442695, %v5595_v27  ;;  %v2511_v40 = vadd.f32 %v3938_v61, %v5505_v21  ;;  %v5636_v3 = vpop.f32.mrf.mxu0  ;;  %v4325_v32 = vld [vmem:[%s4810_s23 + $0x68] sm:$0xff]   ;;  %4033 = vmatpush3.bf16.msra.mxu1 %v4324_v41 }
 0x363   : > { %v5608_v36 = vmul.f32 %v4504_v45, %v5536_v57  ;;  %v3940_v19 = vpop.f32.mrf.mxu1  ;;  %4034 = vmatprep.subr.bf16.mxu1 %v4325_v32  ;;  %v4332_v32 = vld [vmem:[%s4810_s23 + $0x10] sm:$0xff]  }
 0x364   : > { %4517 = vrcp.f32 %v2841_v15  ;;  %v5610_v53 = vadd.f32 %v2671_v33, %v2511_v40  ;;  %v3941_v14 = vadd.f32 %v3940_v19, %v3939_v37  ;;  %v4326_v40 = vld [vmem:[%s4810_s23 + $0x28] sm:$0xff]   ;;  %v5649_v6 = vpop.f32.mrf.mxu0 }
 0x365   : > { %4519 = vpow2.f32 %v3759_v13  ;;  %v3942_v26 = vpop.f32.mrf.mxu1  ;;  %v4506_v48 = vpop.eup %4505 }
 0x366   : > { %v3760_v57 = vmul.f32 -1.442695, %v5610_v53  ;;  %v2514_v62 = vadd.f32 %v3941_v14, %v5505_v21  ;;  %v4508_v42 = vpop.eup %4507  ;;  %v2842_v25 = vadd.f32 1.0, %v4506_v48  ;;  %4035 = vmatpush3.bf16.msra.mxu1 %v4326_v40 }
 0x367   : > { %v3943_v52 = vpop.f32.mrf.mxu1  ;;  %v5628_v29 = vmul.f32 %v4508_v42, %v5540_v24  ;;  %4036 = vmatprep.subr.bf16.mxu1 %v4327_v51 }
 0x368   : > { %4521 = vpow2.f32 %v3760_v57  ;;  %v5618_v46 = vadd.f32 %v2674_v18, %v2514_v62  ;;  %v3944_v58 = vadd.f32 %v3943_v52, %v3942_v26  ;;  %v4328_v18 = vld [vmem:[%s4810_s23 + $0x20] sm:$0xff]  }
 0x369   : > { %v4510_v22 = vpop.eup %4509  ;;  %v3945_v35 = vpop.f32.mrf.mxu1  ;;  %4523 = vrcp.f32 %v2842_v25 }
 0x36a   : > { %v4512_v23 = vpop.eup %4511  ;;  %v5631_v10 = vmul.f32 %v4510_v22, %v5544_v4  ;;  %v3761_v63 = vmul.f32 -1.442695, %v5618_v46  ;;  %v2519_v33 = vadd.f32 %v3944_v58, %v5505_v21  ;;  %v5667_v25 = vpop.f32.mrf.mxu0  ;;  %4037 = vmatpush3.bf16.msra.mxu1 %v4328_v18 }
 0x36b   : > { %v2843_v61 = vadd.f32 1.0, %v4512_v23  ;;  %v3946_v31 = vpop.f32.mrf.mxu1  ;;  %4038 = vmatprep.subr.bf16.mxu1 %v4329_v9  ;;  %v4331_v23 = vld [vmem:[%s4810_s23 + $0x50] sm:$0xff]  }
 0x36c   : > { %4525 = vpow2.f32 %v3761_v63  ;;  %v5640_v24 = vadd.f32 %v5580_v8, %v2519_v33  ;;  %v3947_v4 = vadd.f32 %v3946_v31, %v3945_v35  ;;  %v5677_v22 = vpop.f32.mrf.mxu0 }
 0x36d   : > { %v4514_v38 = vpop.eup %4513  ;;  %4527 = vrcp.f32 %v2843_v61  ;;  %v5644_v44 = vpop.f32.mrf.mxu1 }
 0x36e   : > { %v4516_v45 = vpop.eup %4515  ;;  %v3762_v15 = vmul.f32 -1.442695, %v5640_v24  ;;  %v2522_v13 = vadd.f32 %v3947_v4, %v5505_v21  ;;  %v5660_v57 = vmul.f32 %v4514_v38, %v5554_v47  ;;  %4039 = vmatpush3.bf16.msra.mxu1 %v4330_v34  ;;  %v5685_v4 = vpop.f32.mrf.mxu0 }
 0x36f   : > { %v2844_v8 = vadd.f32 1.0, %v4516_v45  ;;  %v5651_v19 = vpop.f32.mrf.mxu1  ;;  %4040 = vmatprep.subr.bf16.mxu1 %v4331_v23 }
 0x370   : > { %4529 = vpow2.f32 %v3762_v15  ;;  %v5655_v28 = vadd.f32 %v5602_v1, %v2522_v13 }
 0x371   : > { %v4518_v14 = vpop.eup %4517  ;;  %v5657_v26 = vpop.f32.mrf.mxu1  ;;  %4531 = vrcp.f32 %v2844_v8 }
 0x372   : > { %v4520_v48 = vpop.eup %4519  ;;  %v5663_v62 = vmul.f32 %v4518_v14, %v5560_v39  ;;  %v3763_v42 = vmul.f32 -1.442695, %v5655_v28  ;;  %4041 = vmatpush3.bf16.msra.mxu1 %v4332_v32  ;;  %v5697_v14 = vpop.f32.mrf.mxu0 }
 0x373   : > { %v2845_v1 = vadd.f32 1.0, %v4520_v48  ;;  %v5669_v52 = vpop.f32.mrf.mxu1 }
 0x374   : > { %4533 = vpow2.f32 %v3763_v42  ;;  %v4214_v9 = vpop.f32.mrf.mxu0 }
 0x375   : > { %v4522_v39 = vpop.eup %4521  ;;  %4535 = vrcp.f32 %v2845_v1  ;;  %v5674_v0 = vpop.f32.mrf.mxu1 }
 0x376   : > { %v2846_v58 = vadd.f32 1.0, %v4522_v39  ;;  %v4524_v63 = vpop.eup %4523 }
 0x377   : > { %v5679_v35 = vpop.f32.mrf.mxu1  ;;  %v5688_v38 = vmul.f32 %v4524_v63, %v5570_v43 }
 0x378   : > { %4537 = vrcp.f32 %v2846_v58 }
 0x379   : > { %v4526_v33 = vpop.eup %4525  ;;  %v5682_v41 = vpop.f32.mrf.mxu1 }
 0x37a   : > { %v4528_v61 = vpop.eup %4527  ;;  %v2847_v31 = vadd.f32 1.0, %v4526_v33 }
 0x37b   : > { %v5691_v45 = vmul.f32 %v4528_v61, %v5576_v2  ;;  %v5693_v15 = vpop.f32.mrf.mxu1  ;;  %v2706_v61 = vpop.f32.mrf.mxu0 }
 0x37c   : > { %4539 = vrcp.f32 %v2847_v31 }
 0x37d   : > { %v4530_v13 = vpop.eup %4529  ;;  %v3960_v40 = vpop.f32.mrf.mxu1 }
 0x37e   : > { %v2848_v51 = vadd.f32 1.0, %v4530_v13  ;;  %v4532_v42 = vpop.eup %4531 }
 0x37f   : > { %v3961_v48 = vpop.f32.mrf.mxu1  ;;  %v5700_v39 = vmul.f32 %v4532_v42, %v5588_v54  ;;  %v4217_v42 = vpop.f32.mrf.mxu0 }
 0x380   : > { %4541 = vrcp.f32 %v2848_v51 }
 0x381   : > { %v4534_v43 = vpop.eup %4533  ;;  %v3963_v18 = vpop.f32.mrf.mxu1 }
 0x382   : > { %v4536_v1 = vpop.eup %4535  ;;  %v2849_v2 = vadd.f32 1.0, %v4534_v43  ;;  %v2719_v7 = vpop.f32.mrf.mxu0 }
 0x383   : > { %v5703_v58 = vmul.f32 %v4536_v1, %v5595_v27  ;;  %v3964_v34 = vpop.f32.mrf.mxu1 }
 0x384   : > { %4543 = vrcp.f32 %v2849_v2  ;;  %v3965_v11 = vadd.f32 %v3964_v34, %v3963_v18 }
 0x385   : > { %v3966_v23 = vpop.f32.mrf.mxu1  ;;  %v4538_v33 = vpop.eup %4537 }
 0x386   : > { %v5708_v51 = vmul.f32 %v4538_v33, %v5610_v53  ;;  %v2546_v18 = vadd.f32 %v3965_v11, %v5505_v21 }
 0x387   : > { %v3967_v31 = vpop.f32.mrf.mxu1 }
 0x388   : > { %v3968_v47 = vadd.f32 %v3967_v31, %v3966_v23 }
 0x389   : > { %v4540_v32 = vpop.eup %4539  ;;  %v3969_v13 = vpop.f32.mrf.mxu1 }
 0x38a   : > { %v5711_v54 = vmul.f32 %v4540_v32, %v5618_v46  ;;  %v4218_v46 = vpop.f32.mrf.mxu0 }
 0x38b   : > { %v3970_v27 = vpop.f32.mrf.mxu1 }
 0x38c   : > { %v3971_v33 = vadd.f32 %v3970_v27, %v3969_v13 }
 0x38d   : > { %v3972_v1 = vpop.f32.mrf.mxu1  ;;  %v4542_v2 = vpop.eup %4541 }
 0x38e   : > { %v5716_v37 = vmul.f32 %v4542_v2, %v5640_v24  ;;  %v2554_v24 = vadd.f32 %v3971_v33, %v5505_v21 }
 0x38f   : > { %v3973_v30 = vpop.f32.mrf.mxu1 }
 0x390   : > { %v3974_v59 = vadd.f32 %v3973_v30, %v3972_v1  ;;  %v2722_v1 = vpop.f32.mrf.mxu0  ;;  %v5736_v34 = vadd.f32 %v4214_v9, %v2554_v24  ;;  %v5752_v9 = vadd.f32 %v2706_v61, %v2546_v18 }
 0x391   : > { %v4544_v56 = vpop.eup %4543  ;;  %v3975_v60 = vpop.f32.mrf.mxu1 }
 0x392   : > { %v5719_v53 = vmul.f32 %v4544_v56, %v5655_v28  ;;  %v2559_v8 = vadd.f32 %v3974_v59, %v5505_v21  ;;  %v2551_v56 = vadd.f32 %v3968_v47, %v5505_v21  ;;  %v3962_v59 = vadd.f32 %v3961_v48, %v3960_v40 }
 0x393   : > { %v3976_v32 = vpop.f32.mrf.mxu1  ;;  %v3769_v24 = vmul.f32 -1.442695, %v5752_v9 }
 0x394   : > { %v3977_v43 = vadd.f32 %v3976_v32, %v3975_v60  ;;  %v2969_v63 = vpack.c.bf16 %v5719_v53, %v5716_v37  ;;  %v5727_v28 = vadd.f32 %v2719_v7, %v2559_v8  ;;  %v5739_v7 = vadd.f32 %v5685_v4, %v2551_v56 }
 0x395   : > { %v3978_v5 = vpop.f32.mrf.mxu1  ;;  %v3956_v8 = vadd.f32 %v5679_v35, %v5674_v0  ;;  %v2543_v48 = vadd.f32 %v3962_v59, %v5505_v21  ;;  %v3950_v35 = vadd.f32 %v5651_v19, %v5644_v44 }
 0x396   : > { %v2562_v30 = vadd.f32 %v3977_v43, %v5505_v21  ;;  %v3959_v43 = vadd.f32 %v5693_v15, %v5682_v41  ;;  %v3772_v47 = vmul.f32 -1.442695, %v5727_v28  ;;  %v3953_v15 = vadd.f32 %v5669_v52, %v5657_v26 }
 0x397   : > { %v3979_v2 = vpop.f32.mrf.mxu1  ;;  %v3770_v32 = vmul.f32 -1.442695, %v5739_v7 }
 0x398   : > { %v5729_v13 = vadd.f32 %v2722_v1, %v2562_v30  ;;  %v3980_v23 = vadd.f32 %v3979_v2, %v3978_v5  ;;  %v2538_v4 = vadd.f32 %v3959_v43, %v5505_v21  ;;  %v2535_v30 = vadd.f32 %v3956_v8, %v5505_v21 }
 0x399   : > { %v3981_v60 = vpop.f32.mrf.mxu1  ;;  %v5762_v1 = vadd.f32 %v5697_v14, %v2543_v48  ;;  %v2530_v52 = vadd.f32 %v3953_v15, %v5505_v21 }
 0x39a   : > { %v3773_v31 = vmul.f32 -1.442695, %v5729_v13  ;;  %v2567_v27 = vadd.f32 %v3980_v23, %v5505_v21  ;;  %v5767_v61 = vadd.f32 %v5667_v25, %v2538_v4  ;;  %v5772_v44 = vadd.f32 %v5636_v3, %v2535_v30 }
 0x39b   : > { %v3982_v33 = vpop.f32.mrf.mxu1  ;;  %v3768_v19 = vmul.f32 -1.442695, %v5762_v1  ;;  %v5776_v14 = vadd.f32 %v5677_v22, %v2530_v52 }
 0x39c   : > { %v5742_v5 = vadd.f32 %v4217_v42, %v2567_v27  ;;  %v3983_v40 = vadd.f32 %v3982_v33, %v3981_v60  ;;  %4545 = vpow2.f32 %v3773_v31  ;;  %v3771_v42 = vmul.f32 -1.442695, %v5736_v34 }
 0x39d   : > { %4547 = vpow2.f32 %v3772_v47  ;;  %v3767_v2 = vmul.f32 -1.442695, %v5767_v61  ;;  %v3766_v56 = vmul.f32 -1.442695, %v5772_v44 }
 0x39e   : > { %v3774_v41 = vmul.f32 -1.442695, %v5742_v5  ;;  %v2570_v11 = vadd.f32 %v3983_v40, %v5505_v21 }
 0x3a0   : > { %v5756_v0 = vadd.f32 %v4218_v46, %v2570_v11  ;;  %4549 = vpow2.f32 %v3774_v41  ;;  %v2527_v46 = vadd.f32 %v3950_v35, %v5505_v21  ;;  %v3765_v21 = vmul.f32 -1.442695, %v5776_v14 }
 0x3a1   : > { %4551 = vpow2.f32 %v3771_v42 }
 0x3a2   : > { %v3775_v26 = vmul.f32 -1.442695, %v5756_v0  ;;  %4553 = vpow2.f32 %v3770_v32  ;;  %v5780_v25 = vadd.f32 %v5649_v6, %v2527_v46 }
 0x3a4   : > { %4555 = vpow2.f32 %v3775_v26  ;;  %v3764_v59 = vmul.f32 -1.442695, %v5780_v25 }
 0x3a5   : > { %4557 = vpow2.f32 %v3769_v24 }
 0x3a6   : > { %4559 = vpow2.f32 %v3768_v19 }
 0x3a7   : > { %4561 = vpow2.f32 %v3767_v2 }
 0x3a8   : > { %4563 = vpow2.f32 %v3766_v56 }
 0x3a9   : > { %v4546_v23 = vpop.eup %4545  ;;  %4565 = vpow2.f32 %v3765_v21 }
 0x3aa   : > { %v4548_v3 = vpop.eup %4547  ;;  %v2859_v22 = vadd.f32 1.0, %v4546_v23  ;;  %4567 = vpow2.f32 %v3764_v59 }
 0x3ab   : > { %v2858_v43 = vadd.f32 1.0, %v4548_v3 }
 0x3ac   : > { %4569 = vrcp.f32 %v2859_v22 }
 0x3ad   : > { %v4550_v60 = vpop.eup %4549 }
 0x3ae   : > { %v2860_v31 = vadd.f32 1.0, %v4550_v60  ;;  %v4552_v27 = vpop.eup %4551 }
 0x3af   : > { %v4554_v18 = vpop.eup %4553  ;;  %v2857_v33 = vadd.f32 1.0, %v4552_v27 }
 0x3b0   : > { %4571 = vrcp.f32 %v2860_v31  ;;  %v2856_v8 = vadd.f32 1.0, %v4554_v18  ;;  %v5943_v18 = vpack.c.bf16 %v5703_v58, %v5700_v39 }
 0x3b1   : > { %v4556_v6 = vpop.eup %4555  ;;  %4573 = vrcp.f32 %v2858_v43 }
 0x3b2   : > { %v2861_v47 = vadd.f32 1.0, %v4556_v6  ;;  %v4558_v40 = vpop.eup %4557 }
 0x3b3   : > { %v4560_v48 = vpop.eup %4559  ;;  %v2855_v41 = vadd.f32 1.0, %v4558_v40 }
 0x3b4   : > { %4575 = vrcp.f32 %v2861_v47  ;;  %v4562_v11 = vpop.eup %4561  ;;  %v2854_v15 = vadd.f32 1.0, %v4560_v48 }
 0x3b5   : > { %4577 = vrcp.f32 %v2857_v33  ;;  %v4564_v4 = vpop.eup %4563  ;;  %v2853_v42 = vadd.f32 1.0, %v4562_v11 }
 0x3b6   : > { %4579 = vrcp.f32 %v2856_v8  ;;  %v4566_v32 = vpop.eup %4565  ;;  %v2852_v35 = vadd.f32 1.0, %v4564_v4 }
 0x3b7   : > { %4581 = vrcp.f32 %v2855_v41  ;;  %v4568_v30 = vpop.eup %4567  ;;  %v2851_v52 = vadd.f32 1.0, %v4566_v32  ;;  %v3780_v41 = vld [vmem:[%s652_s19] ss:$0 sm:$0xff] }
 0x3b8   : > { %4583 = vrcp.f32 %v2854_v15  ;;  %v2850_v19 = vadd.f32 1.0, %v4568_v30 }
 0x3b9   : > { %v4570_v26 = vpop.eup %4569  ;;  %4585 = vrcp.f32 %v2853_v42 }
 0x3ba   : > { %4587 = vrcp.f32 %v2852_v35  ;;  %v2955_v21 = vmul.f32 %v4570_v26, %v5729_v13 }
 0x3bb   : > { %4589 = vrcp.f32 %v2851_v52 }
 0x3bc   : > { %4591 = vrcp.f32 %v2850_v19 }
 0x3bd   : > { %v4572_v24 = vpop.eup %4571 }
 0x3be   : > { %v4574_v46 = vpop.eup %4573  ;;  %v2956_v56 = vmul.f32 %v4572_v24, %v5742_v5 }
 0x3bf   : > { %v2954_v60 = vmul.f32 %v4574_v46, %v5727_v28  ;;  %v5944_v28 = vpack.c.bf16 %v5691_v45, %v5688_v38 }
 0x3c1   : > { %v4576_v2 = vpop.eup %4575  ;;  %v2974_v31 = vpack.c.bf16 %v2955_v21, %v2954_v60  ;;  %v4601_v21 = vld [vmem:[#allocation2] sm:$0xff] }
 0x3c2   : > { %v2957_v23 = vmul.f32 %v4576_v2, %v5756_v0  ;;  %v4578_v3 = vpop.eup %4577 }
 0x3c3   : > { %v4580_v22 = vpop.eup %4579  ;;  %v2953_v27 = vmul.f32 %v4578_v3, %v5736_v34 }
 0x3c4   : > { %v2975_v59 = vpack.c.bf16 %v2957_v23, %v2956_v56  ;;  %v4582_v43 = vpop.eup %4581  ;;  %v2952_v5 = vmul.f32 %v4580_v22, %v5739_v7  ;;  %v5945_v7 = vpack.c.bf16 %v5663_v62, %v5660_v57  ;;  %v5947_v62 = vpack.c.bf16 %v5608_v36, %v5605_v49  ;;  %v4602_v22 = vld [vmem:[#allocation2 + $0x8] sm:$0xff] }
 0x3c5   : > { %v4584_v0 = vpop.eup %4583  ;;  %v2951_v6 = vmul.f32 %v4582_v43, %v5752_v9  ;;  %v5951_v49 = vpack.c.bf16 %v5550_v20, %v5547_v17  ;;  %v5952_v36 = vmov 1.0|1.0   ;;  %v4676_v43 = vmov (%p3221_p6), 0.0  }
 0x3c6   : > { %4008 = vmatprep.subr.bf16.mxu0 %v2975_v59  ;;  %v2973_v13 = vpack.c.bf16 %v2953_v27, %v2952_v5  ;;  %v4586_v33 = vpop.eup %4585  ;;  %v2950_v34 = vmul.f32 %v4584_v0, %v5762_v1  ;;  %v5946_v1 = vpack.c.bf16 %v5631_v10, %v5628_v29  ;;  %v5949_v29 = vpack.c.bf16 %v5566_v50, %v5563_v16  ;;  %v4335_v16 = vld [vmem:[%s4810_s23 + $0x40] sm:$0xff]   ;;  %v4603_v27 = vld [vmem:[%s5920_s13 + $0x38] sm:$0xff] (%p3221_p6)   ;;  %v4605_v5 = vld [vmem:[%s5920_s13 + $0x28] sm:$0xff] (%p3221_p6)  }
 0x3c7   : > { %4009 = vmatpush3.bf16.msra.mxu0 %v5943_v18  ;;  %v4588_v47 = vpop.eup %4587  ;;  %v2949_v39 = vmul.f32 %v4586_v33, %v5767_v61  ;;  %v5950_v10 = vpack.c.bf16 %v5711_v54, %v5708_v51  ;;  %v4336_v50 = vld [vmem:[%s4810_s23] sm:$0xff]   ;;  %v4604_v18 = vld [vmem:[%s5920_s13 + $0x30] sm:$0xff] (%p3221_p6)   ;;  %v3246_v33 = vld [vmem:[%s5956_s18 + $0x8] sm:$0xff] (%p3221_p6) }
 0x3c8   : > { %4010 = vmatprep.subr.bf16.mxu0 %v2974_v31  ;;  %v2972_v40 = vpack.c.bf16 %v2951_v6, %v2950_v34  ;;  %v4590_v58 = vpop.eup %4589  ;;  %v2948_v9 = vmul.f32 %v4588_v47, %v5772_v44  ;;  %v5948_v44 = vpack.c.bf16 %v5586_v12, %v5583_v55  ;;  %v4333_v55 = vld [vmem:[%s4810_s23 + $0x48] sm:$0xff]   ;;  %v3248_v0 = vld [vmem:[%s5955_s16] sm:$0xf] (%p3221_p6)  ;;  %v4607_v47 = vld [vmem:[%s5920_s13 + $0x18] sm:$0xff] (%p3221_p6)   ;;  %s5957_s16 = sld [smem:[#allocation14_spill]] (%p3221_p6) }
 0x3c9   : > { %v4592_v8 = vpop.eup %4591  ;;  %v2947_v45 = vmul.f32 %v4590_v58, %v5776_v14  ;;  %v4334_v12 = vld [vmem:[%s4810_s23 + $0x8] sm:$0xff]   ;;  %4042 = vmatprep.subr.bf16.mxu1 %v4333_v55  ;;  %v3245_v6 = vld [vmem:[%s5956_s18] sm:$0xff] (%p3221_p6) }
 0x3ca   : > { %v2971_v38 = vpack.c.bf16 %v2949_v39, %v2948_v9  ;;  %v2946_v61 = vmul.f32 %v4592_v8, %v5780_v25  ;;  %4043 = vmatpush3.bf16.msra.mxu1 %v4334_v12  ;;  %v5954_v25 = vld [vmem:[#allocation10_spill] sm:$0xff]  ;;  %v4609_v39 = vld [vmem:[%s5920_s13 + $0x8] sm:$0xff] (%p3221_p6)  }
 0x3cb   : > { %4011 = vmatpush3.bf16.msra.mxu0 %v5944_v28  ;;  %4044 = vmatprep.subr.bf16.mxu1 %v4335_v16  ;;  %v3247_v28 = vpack.c.bf16 (%p3221_p6), %v3246_v33, %v3245_v6  ;;  %v4606_v34 = vld [vmem:[%s5920_s13 + $0x20] sm:$0xff] (%p3221_p6)  }
 0x3cc   : > { %4012 = vmatprep.subr.bf16.mxu0 %v2973_v13  ;;  %v2970_v57 = vpack.c.bf16 %v2947_v45, %v2946_v61  ;;  %v3253_v13 = vsel (%p3221_p6), %vm849_vm3, %v3248_v0, 0  ;;  %v4610_v58 = vld [vmem:[%s5920_s13] sm:$0xff] (%p3221_p6)  }
 0x3ce   : > { %4045 = vmatpush3.bf16.msra.mxu1 %v4336_v50 }
 0x3cf   : > { %4013 = vmatpush3.bf16.msra.mxu0 %v5945_v7  ;;  %4225 = vmatprep.subr.bf16.mxu1 (%p3221_p6), %v4676_v43 }
 0x3d0   : > { %4014 = vmatprep.subr.bf16.mxu0 %v2972_v40  ;;  %v4608_v40 = vld [vmem:[%s5920_s13 + $0x10] sm:$0xff] (%p3221_p6)  }
 0x3d3   : > { %4015 = vmatpush3.bf16.msra.mxu0 %v5946_v1 }
 0x3d4   : > { %4016 = vmatprep.subr.bf16.mxu0 %v2971_v38 }
 0x3d7   : > { %4017 = vmatpush3.bf16.msra.mxu0 %v5947_v62  ;;  %v3809_v62 = vld [vmem:[%s5957_s16] ss:$0 sm:$0xff] (%p3221_p6) }
 0x3d8   : > { %4018 = vmatprep.subr.bf16.mxu0 %v2970_v57 }
 0x3db   : > { %4019 = vmatpush3.bf16.msra.mxu0 %v5948_v44 }
 0x3dc   : > { %4020 = vmatprep.subr.bf16.mxu0 %v2969_v63 }
 0x3df   : > { %4021 = vmatpush3.bf16.msra.mxu0 %v5949_v29 }
 0x3e0   : > { %4022 = vmatprep.subr.bf16.mxu0 %v5950_v10 }
 0x3e3   : > { %4023 = vmatpush3.bf16.msra.mxu0 %v5951_v49 }
 0x3e4   : > { %4219 = vmatprep.subr.bf16.mxu0 (%p3221_p6), %v4676_v43 }
 0x3e6   : > { %3779 = vmatmul.mubr.msk.bf16.vlgmr.msra.gmra.mxu0 %vm5622_vm8, %v5952_v36 }
 0x3e7   : > { %4221 = vmatprep.mubr.msk.bf16.mxu0 (%p3221_p6), %vm4677_vm10, %v4676_v43  ;;  %4220 = vmatpush3.bf16.msra.mxu0 (%p3221_p6), %v3253_v13 }
 0x3ee   : > { %4222 = vmatmul.mubr.msk.bf16.vlgmr.msra.gmra.mxu0 (%p3221_p6), %vm800_vm4, %v3247_v28 }
 0x4a6   : > { %v4024_v37 = vpop.f32.mrf.mxu0 }
 0x4a8   : > { %v4025_v63 = vpop.f32.mrf.mxu0 }
 0x4a9   : > { %v4026_v17 = vadd.f32 %v4025_v63, %v4024_v37 }
 0x4aa   : > { %v4027_v51 = vpop.f32.mrf.mxu0 }
 0x4ac   : > { %v4028_v54 = vpop.f32.mrf.mxu0 }
 0x4ad   : > { %v4029_v20 = vadd.f32 %v4028_v54, %v4027_v51 }
 0x4ae   : > { %v3289_v38 = vpop.f32.mrf.mxu0 (%p3221_p6) }
 0x4af   : > { %v3026_v53 = vpack.c.bf16 %v4029_v20, %v4026_v17 }
 0x4b0   : > { %v4223_v45 = vpop.f32.mrf.mxu0 (%p3221_p6) }
 0x4b1   : > { %3194 = vmatprep.mubr.bf16.mxu1 %v3026_v53 }
 0x4b2   : > { %3195 = vmatmul.mubr.bf16.vlgmr.msra.gmra.mxu1 %v5954_v25  ;;  %v3292_v1 = vpop.f32.mrf.mxu0 (%p3221_p6) }
 0x4b3   : > { %4226 = vmatpush3.bf16.msra.mxu1 (%p3221_p6), %v4603_v27  ;;  %4241 = vmatprep.mubr.msk.bf16.mxu1 (%p3221_p6), %vm4677_vm10, %v4676_v43 }
 0x4b4   : > { %4227 = vmatprep.subr.bf16.mxu1 (%p3221_p6), %v4676_v43  ;;  %v4224_v61 = vpop.f32.mrf.mxu0 (%p3221_p6) }
 0x4b7   : > { %4228 = vmatpush3.bf16.msra.mxu1 (%p3221_p6), %v4604_v18 }
 0x4b8   : > { %4229 = vmatprep.subr.bf16.mxu1 (%p3221_p6), %v4676_v43 }
 0x4bb   : > { %4230 = vmatpush3.bf16.msra.mxu1 (%p3221_p6), %v4605_v5 }
 0x4bc   : > { %4231 = vmatprep.subr.bf16.mxu1 (%p3221_p6), %v4676_v43 }
 0x4bf   : > { %4232 = vmatpush3.bf16.msra.mxu1 (%p3221_p6), %v4606_v34 }
 0x4c0   : > { %4233 = vmatprep.subr.bf16.mxu1 (%p3221_p6), %v4676_v43 }
 0x4c3   : > { %4234 = vmatpush3.bf16.msra.mxu1 (%p3221_p6), %v4607_v47 }
 0x4c4   : > { %4235 = vmatprep.subr.bf16.mxu1 (%p3221_p6), %v4676_v43 }
 0x4c7   : > { %4236 = vmatpush3.bf16.msra.mxu1 (%p3221_p6), %v4608_v40 }
 0x4c8   : > { %4237 = vmatprep.subr.bf16.mxu1 (%p3221_p6), %v4676_v43 }
 0x4cb   : > { %4238 = vmatpush3.bf16.msra.mxu1 (%p3221_p6), %v4609_v39 }
 0x4cc   : > { %4239 = vmatprep.subr.bf16.mxu1 (%p3221_p6), %v4676_v43 }
 0x4cf   : > { %4240 = vmatpush3.bf16.msra.mxu1 (%p3221_p6), %v4610_v58 }
 0x572   : > { %v4046_v48 = vpop.f32.mrf.mxu1 }
 0x574   : > { %v4047_v11 = vpop.f32.mrf.mxu1 }
 0x575   : > { %v4048_v15 = vadd.f32 %v4047_v11, %v4046_v48 }
 0x576   : > { %v4049_v4 = vpop.f32.mrf.mxu1 }
 0x577   : > { %v3197_v42 = vadd.f32 %v4048_v15, %v3780_v41 }
 0x578   : > { %v4050_v32 = vpop.f32.mrf.mxu1 }
 0x579   : > { %v3797_v35 = vmul.f32 -1.442695, %v3197_v42  ;;  %v4051_v30 = vadd.f32 %v4050_v32, %v4049_v4 }
 0x57b   : > { %4593 = vpow2.f32 %v3797_v35  ;;  %v3200_v26 = vadd.f32 %v4051_v30, %v3780_v41 }
 0x57d   : > { %v3798_v52 = vmul.f32 -1.442695, %v3200_v26 }
 0x57f   : > { %4595 = vpow2.f32 %v3798_v52 }
 0x588   : > { %v4594_v24 = vpop.eup %4593 }
 0x589   : > { %v3209_v46 = vadd.f32 1.0, %v4594_v24 }
 0x58b   : > { %4597 = vrcp.f32 %v3209_v46 }
 0x58c   : > { %v4596_v19 = vpop.eup %4595 }
 0x58d   : > { %v3210_v2 = vadd.f32 1.0, %v4596_v19 }
 0x58f   : > { %4599 = vrcp.f32 %v3210_v2 }
 0x598   : > { %v4598_v56 = vpop.eup %4597 }
 0x599   : > { %v3215_v23 = vmul.f32 %v4598_v56, %v3197_v42 }
 0x59b   : > { %v3217_v3 = vadd.f32 %v4601_v21, %v3215_v23 }
 0x59c   : > { %v4600_v59 = vpop.eup %4599 }
 0x59d   : > { %3219 = vst [vmem:[#allocation2] sm:$0xff] %v3217_v3  ;;  %v3216_v60 = vmul.f32 %v4600_v59, %v3200_v26  ;;  %3225 = sbr.rel (!%p3221_p6) target bundleno = 1687 (0x697), region = 100 }
 0x59f   : > { %v3218_v31 = vadd.f32 %v4602_v22, %v3216_v60 }
 0x5a1   : > { %3220 = vst [vmem:[#allocation2 + $0x8] sm:$0xff] %v3218_v31 }
 0x5a4   : > { %v3226_v7 = vld [vmem:[#allocation2] sm:$0xff] }
 0x5a8   : > { %v3227_v9 = vld [vmem:[#allocation2 + $0x8] sm:$0xff] }
 0x5a9   : > { %v3228_v8 = vpack.c.bf16 %v3227_v9, %v3226_v7 }
 0x5ab   : > { %4242 = vmatmul.mubr.bf16.vlgmr.msra.gmra.mxu1 %v3228_v8 }
 0x66b   : > { %v3378_v57 = vpop.f32.mrf.mxu1 }
 0x66c   : > { %v3379_v44 = vadd.f32 %v3378_v57, %v3289_v38 }
 0x66d   : > { %v4243_v29 = vpop.f32.mrf.mxu1 }
 0x66e   : > { %v3392_v10 = vadd.f32 %v3809_v62, %v3379_v44 }
 0x66f   : > { %v3381_v49 = vpop.f32.mrf.mxu1 }
 0x670   : > { %v3810_v36 = vmul.f32 -1.442695, %v3392_v10  ;;  %v3382_v14 = vadd.f32 %v3381_v49, %v3292_v1 }
 0x671   : > { %v4244_v55 = vpop.f32.mrf.mxu1 }
 0x672   : > { %4611 = vpow2.f32 %v3810_v36  ;;  %v3393_v12 = vadd.f32 %v3809_v62, %v3382_v14 }
 0x674   : > { %v3811_v16 = vmul.f32 -1.442695, %v3393_v12 }
 0x676   : > { %4613 = vpow2.f32 %v3811_v16 }
 0x67f   : > { %v4612_v50 = vpop.eup %4611 }
 0x680   : > { %v3400_v37 = vadd.f32 1.0, %v4612_v50 }
 0x682   : > { %4615 = vrcp.f32 %v3400_v37 }
 0x683   : > { %v4614_v63 = vpop.eup %4613 }
 0x684   : > { %v3401_v51 = vadd.f32 1.0, %v4614_v63 }
 0x686   : > { %4617 = vrcp.f32 %v3401_v51 }
 0x68f   : > { %v4616_v54 = vpop.eup %4615 }
 0x690   : > { %v3406_v17 = vmul.f32 %v4616_v54, %v3392_v10 }
 0x692   : > { %3408 = vst [vmem:[#allocation4] sm:$0xff] %v3406_v17 }
 0x693   : > { %v4618_v20 = vpop.eup %4617 }
 0x694   : > { %v3407_v53 = vmul.f32 %v4618_v20, %v3393_v12 }
 0x696   : > { %3409 = vst [vmem:[#allocation4 + $0x8] sm:$0xff] %v3407_v53 }
 0x697 PF: > { %s5958_s22 = sld [smem:[#allocation8_spill]]  ;;  %s4678_s25 = smov [#allocation4]  }
 0x698   : > { %s3416_s20 = sshll.u32 %s4678_s25, 4  ;;  %s3417_s20 = int_to_ptr.vmem [resolvable:$true] %s3416_s20 }
 0x699   : > { %s4619_s30 = scalar_lea.vmem %s3417_s20, 256  ;;  %p4626_p11 = scmp.lt.s32.totalorder %s3417_s20, %s3417_s20 }
 0x69a   : > { %p4620_p8 = scmp.ne.s32.totalorder %s3417_s20, %s4619_s30  ;;  %p4627_p12 = scmp.lt.s32.totalorder %s4619_s30, %s4619_s30 }
 0x69c   : > { %p4628_p13 = por %p4627_p12, %p4626_p11 }
 0x69d   : > { %s5959_s0 = sadd.s32 4294967295, %s5958_s22  }
 0x69e   : > { %p5883_p7 = scmp.eq.s32.totalorder %s5959_s0, 1 }
 0x6a0   : > { %p4621_p9 = pnand %p4620_p8, %p5883_p7 }
 0x6a2   : > { %p4622_p10 = pneg %p4621_p9 }
 0x6a4   : > { %p4629_p0 = pnand %p4628_p13, %p4622_p10 }
 0x6a6   : > { %4632 = shalt.err (!%p4629_p0)
}
 0x6a7   : > { %s4679_s28 = smov 128   ;;  %s4680_s29 = smov 8  }
 0x6a8   : > { %s5961_s26 = sld [smem:[#allocation15_spill]] }
 0x6ae   : > { %4248 = dma.vmem_to_hbm [thread:$0]  (%p5883_p7), %s3417_s20, 256, %s5961_s26, [#allocation5], %s4679_s28, %s4679_s28, %s4680_s29  }
 0x6af   : > { %4656 = dma.done.wait (%p5883_p7), [#allocation5], 256  }
 0x6b0   : > { %4658 = vsyncadd (%p5883_p7), [#allocation5], 4294967040 }
 0x6b1 PF: > { %s5962_s19 = sld [smem:[#allocation8_spill]] }
 0x6b2   : > { %s5963_s21 = sld [smem:[#allocation7_spill]] }
 0x6b3   : > { %s5964_s22 = sld [smem:[#allocation9_spill]] }
 0x6b7   : > { %s27_s23 = sadd.s32 1, %s5962_s19  }
 0x6b8   : > { %p24_p1 = scmp.ge.s32.totalorder %s27_s23, 4  }
 0x6ba   :  { %26 = sbr.rel (!%p24_p1) target bundleno = 7 (0x7), region = 148 }
 0x6bf   :  { %3432 = vsyncpa [#allocation5], 1 }
 0x6c0   :  { %3434 = vsyncpa [#allocation5 + $0x1], 1 }

</bundles_post_ra>
